<compile_context>
chip_gen: v5e
topology: v5e:2x2
jax: 0.10.0
libtpu: 0.0.40
codegen_flags: <defaults>
</compile_context>

<pallas_src>
import math
import jax
import jax.numpy as jnp
from jax.experimental import pallas as pl
from jax.experimental.pallas import tpu as pltpu

# ---------------- static sizes ----------------
B, S = 2, 8
D = 32                 # encoder_embed_dim
H = 4                  # encoder_attention_heads
DH = D // H
FFN = 64               # encoder_ffn_embed_dim
LAYERS = 2             # encoder_layers
VOCAB = 50             # vocab_size
VPAD = 128             # lane-dense padded vocab for the output projection
EPS = 1e-5             # layernorm_eps
EMBED_SCALE = math.sqrt(D)   # no_scale_embedding = False
ALPHA = 1.0                  # no deepnorm -> residual * 1.0 + x
N = B * S


# ---------------- fully fused encoder kernel ----------------
def _encoder_kernel(embed_ref, keep_ref, bias_ref,
                    ln1g_ref, ln1b_ref, wqkv_ref, bqkv_ref, wo_ref, bo_ref,
                    ln2g_ref, ln2b_ref, w1_ref, b1_ref, w2_ref, b2_ref,
                    lnfg_ref, lnfb_ref, outw_ref, o_ref):
    scale = DH ** -0.5

    def layer_norm(x, g, b):
        mean = jnp.mean(x, axis=-1, keepdims=True)
        var = jnp.mean((x - mean) ** 2, axis=-1, keepdims=True)
        return (x - mean) * jax.lax.rsqrt(var + EPS) * g + b

    # forward_embedding already applied embed_scale; apply padding mask here.
    x = embed_ref[...].astype(jnp.float32) * keep_ref[...]      # (N, D)
    pad_bias = bias_ref[...]                                     # (B, 1, S)

    for l in range(LAYERS):                                      # static unroll
        # ---------- self-attention block (pre-norm) ----------
        residual = x
        xn = layer_norm(x, ln1g_ref[l], ln1b_ref[l])
        qkv = (jnp.dot(xn, wqkv_ref[l], preferred_element_type=jnp.float32)
               + bqkv_ref[l])                                    # (N, 3D)
        wo_l = wo_ref[l]                                         # (D, D)

        attn = None
        for h in range(H):                                       # static unroll
            qh = qkv[:, h * DH:(h + 1) * DH] * scale             # (N, DH)
            kh = qkv[:, D + h * DH:D + (h + 1) * DH]
            vh = qkv[:, 2 * D + h * DH:2 * D + (h + 1) * DH]
            q3 = qh.reshape(B, S, DH)
            k3 = kh.reshape(B, S, DH)
            v3 = vh.reshape(B, S, DH)
            s = jnp.einsum('bqd,bkd->bqk', q3, k3,
                           preferred_element_type=jnp.float32)   # (B, S, S)
            s = s + pad_bias                                     # key padding bias
            s = s - jnp.max(s, axis=-1, keepdims=True)
            p = jnp.exp(s)
            p = p / jnp.sum(p, axis=-1, keepdims=True)
            a3 = jnp.einsum('bqk,bkd->bqd', p, v3,
                            preferred_element_type=jnp.float32)  # (B, S, DH)
            # head-merge + out_proj as per-head accumulation (no concat/transpose)
            contrib = jnp.dot(a3.reshape(N, DH),
                              wo_l[h * DH:(h + 1) * DH, :],
                              preferred_element_type=jnp.float32)
            attn = contrib if attn is None else attn + contrib
        x = residual * ALPHA + (attn + bo_ref[l])                # dropout = identity

        # ---------- FFN block (pre-norm) ----------
        residual = x
        xn = layer_norm(x, ln2g_ref[l], ln2b_ref[l])
        hdn = (jnp.dot(xn, w1_ref[l], preferred_element_type=jnp.float32)
               + b1_ref[l])
        hdn = jnp.maximum(hdn, 0.0)                              # relu (f32)
        y = (jnp.dot(hdn, w2_ref[l], preferred_element_type=jnp.float32)
             + b2_ref[l])
        x = residual * ALPHA + y

    # final LayerNorm (encoder_normalize_before & normalize_output)
    x = layer_norm(x, lnfg_ref[...], lnfb_ref[...])
    # bias-free output projection, lane-dense (padded to VPAD=128)
    o_ref[...] = jnp.dot(x, outw_ref[...],
                         preferred_element_type=jnp.float32).astype(o_ref.dtype)


def _full_spec(shape):
    nd = len(shape)
    return pl.BlockSpec(shape, lambda i, _nd=nd: (0,) * _nd)


def fused_encoder(embed2d, keep2d, pad_bias3, p):
    inputs = (embed2d, keep2d, pad_bias3,
              p["ln1_g"], p["ln1_b"], p["wqkv"], p["bqkv"], p["wo"], p["bo"],
              p["ln2_g"], p["ln2_b"], p["w1"], p["b1"], p["w2"], p["b2"],
              p["lnf_g"], p["lnf_b"], p["out_w_pad"])
    return pl.pallas_call(
        _encoder_kernel,
        out_shape=jax.ShapeDtypeStruct((N, VPAD), jnp.float32),
        grid=(1,),
        in_specs=[_full_spec(a.shape) for a in inputs],
        out_specs=_full_spec((N, VPAD)),
        compiler_params=pltpu.CompilerParams(
            dimension_semantics=("arbitrary",)),
    )(*inputs)


# ---------------- encoder forward (gather kept as JAX glue) ----------------
def encoder_forward(params, src_tokens, encoder_padding_mask=None):
    if encoder_padding_mask is None:
        encoder_padding_mask = jnp.zeros_like(src_tokens, dtype=jnp.bool_)
    tok_emb = params["embed_tokens"][src_tokens]          # (B, S, D) gather (glue)
    embed = EMBED_SCALE * tok_emb                          # encoder_embedding
    mask_f = encoder_padding_mask.astype(jnp.float32)      # (B, S)
    keep2d = (1.0 - mask_f).reshape(N, 1)                  # x *= (1 - mask)
    pad_bias3 = (mask_f * (-1e9)).reshape(B, 1, S)         # additive key-padding bias

    logits_pad = fused_encoder(embed.reshape(N, D), keep2d, pad_bias3, params)
    logits = logits_pad[:, :VOCAB].reshape(B, S, VOCAB)

    return {"encoder_out": logits,
            "encoder_embedding": embed,
            "encoder_padding_mask": encoder_padding_mask,
            "encoder_states": [],
            "l_aux": [None] * LAYERS}


# ---------------- deterministic parameter construction ----------------
def init_params(key):
    ks = jax.random.split(key, 2 + LAYERS)
    embed_tokens = jax.random.normal(ks[0], (VOCAB, D), jnp.float32) * (D ** -0.5)
    out_w = jax.random.normal(ks[1], (D, VOCAB), jnp.float32) * (D ** -0.5)
    out_w_pad = jnp.zeros((D, VPAD), jnp.float32).at[:, :VOCAB].set(out_w)

    def lin(k, din, dout):
        return jax.random.normal(k, (din, dout), jnp.float32) * (din ** -0.5)

    wqkv, bqkv, wo, bo = [], [], [], []
    w1, b1, w2, b2 = [], [], [], []
    ln1_g, ln1_b, ln2_g, ln2_b = [], [], [], []
    for i in range(LAYERS):
        lk = jax.random.split(ks[2 + i], 6)
        wq, wk, wv = lin(lk[0], D, D), lin(lk[1], D, D), lin(lk[2], D, D)
        wqkv.append(jnp.concatenate([wq, wk, wv], axis=1))        # (D, 3D)
        bqkv.append(jnp.zeros((1, 3 * D), jnp.float32))
        wo.append(lin(lk[3], D, D))
        bo.append(jnp.zeros((1, D), jnp.float32))
        w1.append(lin(lk[4], D, FFN))
        b1.append(jnp.zeros((1, FFN), jnp.float32))
        w2.append(lin(lk[5], FFN, D))
        b2.append(jnp.zeros((1, D), jnp.float32))
        ln1_g.append(jnp.ones((1, D), jnp.float32))
        ln1_b.append(jnp.zeros((1, D), jnp.float32))
        ln2_g.append(jnp.ones((1, D), jnp.float32))
        ln2_b.append(jnp.zeros((1, D), jnp.float32))

    stack = lambda xs: jnp.stack(xs, axis=0)
    return {
        "embed_tokens": embed_tokens,
        "out_w_pad": out_w_pad,                       # output_projection: bias=False
        "lnf_g": jnp.ones((1, D), jnp.float32),
        "lnf_b": jnp.zeros((1, D), jnp.float32),
        "ln1_g": stack(ln1_g), "ln1_b": stack(ln1_b),
        "wqkv": stack(wqkv),   "bqkv": stack(bqkv),
        "wo": stack(wo),       "bo": stack(bo),
        "ln2_g": stack(ln2_g), "ln2_b": stack(ln2_b),
        "w1": stack(w1),       "b1": stack(b1),
        "w2": stack(w2),       "b2": stack(b2),
    }


# TODO(synk): MoE layers, RelativePositionBias, multiway split, DropPath and
# dropout branches are disabled by this config (eval, moe_freq=0) and are not
# implemented; token-embedding gather stays in plain JAX glue.

if __name__ == "__main__":
    key = jax.random.PRNGKey(0)
    pkey, tkey = jax.random.split(key)
    params = init_params(pkey)
    src_tokens = jax.random.randint(tkey, (B, S), 0, VOCAB, dtype=jnp.int32)

    forward = jax.jit(encoder_forward)
    out = forward(params, src_tokens)
    jax.block_until_ready(out["encoder_out"])

    assert out["encoder_out"].shape == (B, S, VOCAB)
    assert out["encoder_embedding"].shape == (B, S, D)
    assert bool(jnp.all(jnp.isfinite(out["encoder_out"])))
    print("KERNEL_OK")
</pallas_src>

<mosaic_0001>
module attributes {stable_mosaic.version = 11 : i64} {
  func.func @_encoder_kernel(%arg0: i32, %arg1: memref<16x32xf32, #tpu.memory_space<vmem>>, %arg2: memref<16x1xf32, #tpu.memory_space<vmem>>, %arg3: memref<2x1x8xf32, #tpu.memory_space<vmem>>, %arg4: memref<2x1x32xf32, #tpu.memory_space<vmem>>, %arg5: memref<2x1x32xf32, #tpu.memory_space<vmem>>, %arg6: memref<2x32x96xf32, #tpu.memory_space<vmem>>, %arg7: memref<2x1x96xf32, #tpu.memory_space<vmem>>, %arg8: memref<2x32x32xf32, #tpu.memory_space<vmem>>, %arg9: memref<2x1x32xf32, #tpu.memory_space<vmem>>, %arg10: memref<2x1x32xf32, #tpu.memory_space<vmem>>, %arg11: memref<2x1x32xf32, #tpu.memory_space<vmem>>, %arg12: memref<2x32x64xf32, #tpu.memory_space<vmem>>, %arg13: memref<2x1x64xf32, #tpu.memory_space<vmem>>, %arg14: memref<2x64x32xf32, #tpu.memory_space<vmem>>, %arg15: memref<2x1x32xf32, #tpu.memory_space<vmem>>, %arg16: memref<1x32xf32, #tpu.memory_space<vmem>>, %arg17: memref<1x32xf32, #tpu.memory_space<vmem>>, %arg18: memref<32x128xf32, #tpu.memory_space<vmem>>, %arg19: memref<16x128xf32, #tpu.memory_space<vmem>>) attributes {dimension_semantics = [#tpu.dimension_semantics<arbitrary>], iteration_bounds = array<i64: 1>, scalar_prefetch = 0 : i64, scratch_operands = 0 : i64, tpu.core_type = #tpu.core_type<tc>, window_params = [{pipeline_mode = #tpu.pipeline_mode<synchronous>, transform_indices = @transform_0, window_bounds = array<i64: 16, 32>}, {pipeline_mode = #tpu.pipeline_mode<synchronous>, transform_indices = @transform_1, window_bounds = array<i64: 16, 1>}, {pipeline_mode = #tpu.pipeline_mode<synchronous>, transform_indices = @transform_2, window_bounds = array<i64: 2, 1, 8>}, {pipeline_mode = #tpu.pipeline_mode<synchronous>, transform_indices = @transform_3, window_bounds = array<i64: 2, 1, 32>}, {pipeline_mode = #tpu.pipeline_mode<synchronous>, transform_indices = @transform_4, window_bounds = array<i64: 2, 1, 32>}, {pipeline_mode = #tpu.pipeline_mode<synchronous>, transform_indices = @transform_5, window_bounds = array<i64: 2, 32, 96>}, {pipeline_mode = #tpu.pipeline_mode<synchronous>, transform_indices = @transform_6, window_bounds = array<i64: 2, 1, 96>}, {pipeline_mode = #tpu.pipeline_mode<synchronous>, transform_indices = @transform_7, window_bounds = array<i64: 2, 32, 32>}, {pipeline_mode = #tpu.pipeline_mode<synchronous>, transform_indices = @transform_8, window_bounds = array<i64: 2, 1, 32>}, {pipeline_mode = #tpu.pipeline_mode<synchronous>, transform_indices = @transform_9, window_bounds = array<i64: 2, 1, 32>}, {pipeline_mode = #tpu.pipeline_mode<synchronous>, transform_indices = @transform_10, window_bounds = array<i64: 2, 1, 32>}, {pipeline_mode = #tpu.pipeline_mode<synchronous>, transform_indices = @transform_11, window_bounds = array<i64: 2, 32, 64>}, {pipeline_mode = #tpu.pipeline_mode<synchronous>, transform_indices = @transform_12, window_bounds = array<i64: 2, 1, 64>}, {pipeline_mode = #tpu.pipeline_mode<synchronous>, transform_indices = @transform_13, window_bounds = array<i64: 2, 64, 32>}, {pipeline_mode = #tpu.pipeline_mode<synchronous>, transform_indices = @transform_14, window_bounds = array<i64: 2, 1, 32>}, {pipeline_mode = #tpu.pipeline_mode<synchronous>, transform_indices = @transform_15, window_bounds = array<i64: 1, 32>}, {pipeline_mode = #tpu.pipeline_mode<synchronous>, transform_indices = @transform_16, window_bounds = array<i64: 1, 32>}, {pipeline_mode = #tpu.pipeline_mode<synchronous>, transform_indices = @transform_17, window_bounds = array<i64: 32, 128>}, {pipeline_mode = #tpu.pipeline_mode<synchronous>, transform_indices = @transform_18, window_bounds = array<i64: 16, 128>}]} {
    %c0 = arith.constant 0 : index
    %c0_0 = arith.constant 0 : index
    %0 = vector.load %arg1[%c0, %c0_0] : memref<16x32xf32, #tpu.memory_space<vmem>>, vector<16x32xf32>
    %c0_1 = arith.constant 0 : index
    %c0_2 = arith.constant 0 : index
    %1 = vector.load %arg2[%c0_1, %c0_2] : memref<16x1xf32, #tpu.memory_space<vmem>>, vector<16x1xf32>
    %2 = vector.broadcast %1 : vector<16x1xf32> to vector<16x32xf32>
    %3 = arith.mulf %0, %2 : vector<16x32xf32>
    %c0_3 = arith.constant 0 : index
    %c0_4 = arith.constant 0 : index
    %c0_5 = arith.constant 0 : index
    %4 = vector.load %arg3[%c0_3, %c0_4, %c0_5] : memref<2x1x8xf32, #tpu.memory_space<vmem>>, vector<2x1x8xf32>
    %c0_6 = arith.constant 0 : index
    %c0_7 = arith.constant 0 : index
    %c0_8 = arith.constant 0 : index
    %5 = vector.load %arg4[%c0_6, %c0_7, %c0_8] : memref<2x1x32xf32, #tpu.memory_space<vmem>>, vector<1x1x32xf32>
    %6 = vector.shape_cast %5 : vector<1x1x32xf32> to vector<1x32xf32>
    %c0_9 = arith.constant 0 : index
    %c0_10 = arith.constant 0 : index
    %c0_11 = arith.constant 0 : index
    %7 = vector.load %arg5[%c0_9, %c0_10, %c0_11] : memref<2x1x32xf32, #tpu.memory_space<vmem>>, vector<1x1x32xf32>
    %8 = vector.shape_cast %7 : vector<1x1x32xf32> to vector<1x32xf32>
    %cst = arith.constant dense<0.000000e+00> : vector<16xf32>
    %9 = vector.multi_reduction <add>, %3, %cst [1] : vector<16x32xf32> to vector<16xf32>
    %10 = vector.shape_cast %9 : vector<16xf32> to vector<16x1xf32>
    %cst_12 = arith.constant 3.200000e+01 : f32
    %11 = vector.broadcast %cst_12 : f32 to vector<16x1xf32>
    %12 = arith.divf %10, %11 : vector<16x1xf32>
    %13 = vector.broadcast %12 : vector<16x1xf32> to vector<16x32xf32>
    %14 = arith.subf %3, %13 : vector<16x32xf32>
    %15 = arith.mulf %14, %14 : vector<16x32xf32>
    %cst_13 = arith.constant dense<0.000000e+00> : vector<16xf32>
    %16 = vector.multi_reduction <add>, %15, %cst_13 [1] : vector<16x32xf32> to vector<16xf32>
    %17 = vector.shape_cast %16 : vector<16xf32> to vector<16x1xf32>
    %cst_14 = arith.constant 3.200000e+01 : f32
    %18 = vector.broadcast %cst_14 : f32 to vector<16x1xf32>
    %19 = arith.divf %17, %18 : vector<16x1xf32>
    %20 = vector.broadcast %12 : vector<16x1xf32> to vector<16x32xf32>
    %21 = arith.subf %3, %20 : vector<16x32xf32>
    %cst_15 = arith.constant 9.99999974E-6 : f32
    %22 = vector.broadcast %cst_15 : f32 to vector<16x1xf32>
    %23 = arith.addf %19, %22 : vector<16x1xf32>
    %24 = math.rsqrt %23 : vector<16x1xf32>
    %25 = vector.broadcast %24 : vector<16x1xf32> to vector<16x32xf32>
    %26 = arith.mulf %21, %25 : vector<16x32xf32>
    %27 = vector.broadcast %6 : vector<1x32xf32> to vector<16x32xf32>
    %28 = arith.mulf %26, %27 : vector<16x32xf32>
    %29 = vector.broadcast %8 : vector<1x32xf32> to vector<16x32xf32>
    %30 = arith.addf %28, %29 : vector<16x32xf32>
    %c0_16 = arith.constant 0 : index
    %c0_17 = arith.constant 0 : index
    %c0_18 = arith.constant 0 : index
    %31 = vector.load %arg6[%c0_16, %c0_17, %c0_18] : memref<2x32x96xf32, #tpu.memory_space<vmem>>, vector<1x32x96xf32>
    %32 = vector.shape_cast %31 : vector<1x32x96xf32> to vector<32x96xf32>
    %cst_19 = arith.constant dense<0.000000e+00> : vector<16x96xf32>
    %33 = tpu.matmul %30, %32, %cst_19 {dimension_numbers = #tpu.dot_dimension_numbers<[1], [0], [0], [1], [0, 0, 1, 1], [], []>} : vector<16x32xf32>, vector<32x96xf32>, vector<16x96xf32> -> vector<16x96xf32>
    %c0_20 = arith.constant 0 : index
    %c0_21 = arith.constant 0 : index
    %c0_22 = arith.constant 0 : index
    %34 = vector.load %arg7[%c0_20, %c0_21, %c0_22] : memref<2x1x96xf32, #tpu.memory_space<vmem>>, vector<1x1x96xf32>
    %35 = vector.shape_cast %34 : vector<1x1x96xf32> to vector<1x96xf32>
    %36 = vector.broadcast %35 : vector<1x96xf32> to vector<16x96xf32>
    %37 = arith.addf %33, %36 : vector<16x96xf32>
    %c0_23 = arith.constant 0 : index
    %c0_24 = arith.constant 0 : index
    %c0_25 = arith.constant 0 : index
    %38 = vector.load %arg8[%c0_23, %c0_24, %c0_25] : memref<2x32x32xf32, #tpu.memory_space<vmem>>, vector<1x32x32xf32>
    %39 = vector.shape_cast %38 : vector<1x32x32xf32> to vector<32x32xf32>
    %40 = vector.extract_strided_slice %37 {offsets = [0, 0], sizes = [16, 8], strides = [1, 1]} : vector<16x96xf32> to vector<16x8xf32>
    %cst_26 = arith.constant 0.353553385 : f32
    %41 = vector.broadcast %cst_26 : f32 to vector<16x8xf32>
    %42 = arith.mulf %40, %41 : vector<16x8xf32>
    %43 = vector.extract_strided_slice %37 {offsets = [0, 32], sizes = [16, 8], strides = [1, 1]} : vector<16x96xf32> to vector<16x8xf32>
    %44 = vector.extract_strided_slice %37 {offsets = [0, 64], sizes = [16, 8], strides = [1, 1]} : vector<16x96xf32> to vector<16x8xf32>
    %45 = vector.shape_cast %42 : vector<16x8xf32> to vector<2x8x8xf32>
    %46 = vector.shape_cast %43 : vector<16x8xf32> to vector<2x8x8xf32>
    %47 = vector.shape_cast %44 : vector<16x8xf32> to vector<2x8x8xf32>
    "tpu.trace_start"() <{level = 10 : i32, message = "bqd,bkd->bqk"}> : () -> ()
    %cst_27 = arith.constant dense<0.000000e+00> : vector<2x8x8xf32>
    %48 = tpu.matmul %45, %46, %cst_27 {dimension_numbers = #tpu.dot_dimension_numbers<[2], [2], [1], [1], [0, 0, 0, 1, 1, 1], [0], [0]>} : vector<2x8x8xf32>, vector<2x8x8xf32>, vector<2x8x8xf32> -> vector<2x8x8xf32>
    "tpu.trace_stop"() : () -> ()
    %49 = vector.broadcast %4 : vector<2x1x8xf32> to vector<2x8x8xf32>
    %50 = arith.addf %48, %49 : vector<2x8x8xf32>
    %cst_28 = arith.constant dense<0xFF800000> : vector<2x8xf32>
    %51 = vector.multi_reduction <maximumf>, %50, %cst_28 [2] : vector<2x8x8xf32> to vector<2x8xf32>
    %52 = vector.shape_cast %51 : vector<2x8xf32> to vector<2x8x1xf32>
    %53 = vector.broadcast %52 : vector<2x8x1xf32> to vector<2x8x8xf32>
    %54 = arith.subf %50, %53 : vector<2x8x8xf32>
    %55 = math.exp %54 : vector<2x8x8xf32>
    %cst_29 = arith.constant dense<0.000000e+00> : vector<2x8xf32>
    %56 = vector.multi_reduction <add>, %55, %cst_29 [2] : vector<2x8x8xf32> to vector<2x8xf32>
    %57 = vector.shape_cast %56 : vector<2x8xf32> to vector<2x8x1xf32>
    %58 = vector.broadcast %57 : vector<2x8x1xf32> to vector<2x8x8xf32>
    %59 = arith.divf %55, %58 : vector<2x8x8xf32>
    "tpu.trace_start"() <{level = 10 : i32, message = "bqk,bkd->bqd"}> : () -> ()
    %cst_30 = arith.constant dense<0.000000e+00> : vector<2x8x8xf32>
    %60 = tpu.matmul %59, %47, %cst_30 {dimension_numbers = #tpu.dot_dimension_numbers<[2], [1], [1], [2], [0, 0, 0, 1, 1, 2], [0], [0]>} : vector<2x8x8xf32>, vector<2x8x8xf32>, vector<2x8x8xf32> -> vector<2x8x8xf32>
    "tpu.trace_stop"() : () -> ()
    %61 = vector.shape_cast %60 : vector<2x8x8xf32> to vector<16x8xf32>
    %62 = vector.extract_strided_slice %39 {offsets = [0, 0], sizes = [8, 32], strides = [1, 1]} : vector<32x32xf32> to vector<8x32xf32>
    %cst_31 = arith.constant dense<0.000000e+00> : vector<16x32xf32>
    %63 = tpu.matmul %61, %62, %cst_31 {dimension_numbers = #tpu.dot_dimension_numbers<[1], [0], [0], [1], [0, 0, 1, 1], [], []>} : vector<16x8xf32>, vector<8x32xf32>, vector<16x32xf32> -> vector<16x32xf32>
    %64 = vector.extract_strided_slice %37 {offsets = [0, 8], sizes = [16, 8], strides = [1, 1]} : vector<16x96xf32> to vector<16x8xf32>
    %cst_32 = arith.constant 0.353553385 : f32
    %65 = vector.broadcast %cst_32 : f32 to vector<16x8xf32>
    %66 = arith.mulf %64, %65 : vector<16x8xf32>
    %67 = vector.extract_strided_slice %37 {offsets = [0, 40], sizes = [16, 8], strides = [1, 1]} : vector<16x96xf32> to vector<16x8xf32>
    %68 = vector.extract_strided_slice %37 {offsets = [0, 72], sizes = [16, 8], strides = [1, 1]} : vector<16x96xf32> to vector<16x8xf32>
    %69 = vector.shape_cast %66 : vector<16x8xf32> to vector<2x8x8xf32>
    %70 = vector.shape_cast %67 : vector<16x8xf32> to vector<2x8x8xf32>
    %71 = vector.shape_cast %68 : vector<16x8xf32> to vector<2x8x8xf32>
    "tpu.trace_start"() <{level = 10 : i32, message = "bqd,bkd->bqk"}> : () -> ()
    %cst_33 = arith.constant dense<0.000000e+00> : vector<2x8x8xf32>
    %72 = tpu.matmul %69, %70, %cst_33 {dimension_numbers = #tpu.dot_dimension_numbers<[2], [2], [1], [1], [0, 0, 0, 1, 1, 1], [0], [0]>} : vector<2x8x8xf32>, vector<2x8x8xf32>, vector<2x8x8xf32> -> vector<2x8x8xf32>
    "tpu.trace_stop"() : () -> ()
    %73 = vector.broadcast %4 : vector<2x1x8xf32> to vector<2x8x8xf32>
    %74 = arith.addf %72, %73 : vector<2x8x8xf32>
    %cst_34 = arith.constant dense<0xFF800000> : vector<2x8xf32>
    %75 = vector.multi_reduction <maximumf>, %74, %cst_34 [2] : vector<2x8x8xf32> to vector<2x8xf32>
    %76 = vector.shape_cast %75 : vector<2x8xf32> to vector<2x8x1xf32>
    %77 = vector.broadcast %76 : vector<2x8x1xf32> to vector<2x8x8xf32>
    %78 = arith.subf %74, %77 : vector<2x8x8xf32>
    %79 = math.exp %78 : vector<2x8x8xf32>
    %cst_35 = arith.constant dense<0.000000e+00> : vector<2x8xf32>
    %80 = vector.multi_reduction <add>, %79, %cst_35 [2] : vector<2x8x8xf32> to vector<2x8xf32>
    %81 = vector.shape_cast %80 : vector<2x8xf32> to vector<2x8x1xf32>
    %82 = vector.broadcast %81 : vector<2x8x1xf32> to vector<2x8x8xf32>
    %83 = arith.divf %79, %82 : vector<2x8x8xf32>
    "tpu.trace_start"() <{level = 10 : i32, message = "bqk,bkd->bqd"}> : () -> ()
    %cst_36 = arith.constant dense<0.000000e+00> : vector<2x8x8xf32>
    %84 = tpu.matmul %83, %71, %cst_36 {dimension_numbers = #tpu.dot_dimension_numbers<[2], [1], [1], [2], [0, 0, 0, 1, 1, 2], [0], [0]>} : vector<2x8x8xf32>, vector<2x8x8xf32>, vector<2x8x8xf32> -> vector<2x8x8xf32>
    "tpu.trace_stop"() : () -> ()
    %85 = vector.shape_cast %84 : vector<2x8x8xf32> to vector<16x8xf32>
    %86 = vector.extract_strided_slice %39 {offsets = [8, 0], sizes = [8, 32], strides = [1, 1]} : vector<32x32xf32> to vector<8x32xf32>
    %cst_37 = arith.constant dense<0.000000e+00> : vector<16x32xf32>
    %87 = tpu.matmul %85, %86, %cst_37 {dimension_numbers = #tpu.dot_dimension_numbers<[1], [0], [0], [1], [0, 0, 1, 1], [], []>} : vector<16x8xf32>, vector<8x32xf32>, vector<16x32xf32> -> vector<16x32xf32>
    %88 = arith.addf %63, %87 : vector<16x32xf32>
    %89 = vector.extract_strided_slice %37 {offsets = [0, 16], sizes = [16, 8], strides = [1, 1]} : vector<16x96xf32> to vector<16x8xf32>
    %cst_38 = arith.constant 0.353553385 : f32
    %90 = vector.broadcast %cst_38 : f32 to vector<16x8xf32>
    %91 = arith.mulf %89, %90 : vector<16x8xf32>
    %92 = vector.extract_strided_slice %37 {offsets = [0, 48], sizes = [16, 8], strides = [1, 1]} : vector<16x96xf32> to vector<16x8xf32>
    %93 = vector.extract_strided_slice %37 {offsets = [0, 80], sizes = [16, 8], strides = [1, 1]} : vector<16x96xf32> to vector<16x8xf32>
    %94 = vector.shape_cast %91 : vector<16x8xf32> to vector<2x8x8xf32>
    %95 = vector.shape_cast %92 : vector<16x8xf32> to vector<2x8x8xf32>
    %96 = vector.shape_cast %93 : vector<16x8xf32> to vector<2x8x8xf32>
    "tpu.trace_start"() <{level = 10 : i32, message = "bqd,bkd->bqk"}> : () -> ()
    %cst_39 = arith.constant dense<0.000000e+00> : vector<2x8x8xf32>
    %97 = tpu.matmul %94, %95, %cst_39 {dimension_numbers = #tpu.dot_dimension_numbers<[2], [2], [1], [1], [0, 0, 0, 1, 1, 1], [0], [0]>} : vector<2x8x8xf32>, vector<2x8x8xf32>, vector<2x8x8xf32> -> vector<2x8x8xf32>
    "tpu.trace_stop"() : () -> ()
    %98 = vector.broadcast %4 : vector<2x1x8xf32> to vector<2x8x8xf32>
    %99 = arith.addf %97, %98 : vector<2x8x8xf32>
    %cst_40 = arith.constant dense<0xFF800000> : vector<2x8xf32>
    %100 = vector.multi_reduction <maximumf>, %99, %cst_40 [2] : vector<2x8x8xf32> to vector<2x8xf32>
    %101 = vector.shape_cast %100 : vector<2x8xf32> to vector<2x8x1xf32>
    %102 = vector.broadcast %101 : vector<2x8x1xf32> to vector<2x8x8xf32>
    %103 = arith.subf %99, %102 : vector<2x8x8xf32>
    %104 = math.exp %103 : vector<2x8x8xf32>
    %cst_41 = arith.constant dense<0.000000e+00> : vector<2x8xf32>
    %105 = vector.multi_reduction <add>, %104, %cst_41 [2] : vector<2x8x8xf32> to vector<2x8xf32>
    %106 = vector.shape_cast %105 : vector<2x8xf32> to vector<2x8x1xf32>
    %107 = vector.broadcast %106 : vector<2x8x1xf32> to vector<2x8x8xf32>
    %108 = arith.divf %104, %107 : vector<2x8x8xf32>
    "tpu.trace_start"() <{level = 10 : i32, message = "bqk,bkd->bqd"}> : () -> ()
    %cst_42 = arith.constant dense<0.000000e+00> : vector<2x8x8xf32>
    %109 = tpu.matmul %108, %96, %cst_42 {dimension_numbers = #tpu.dot_dimension_numbers<[2], [1], [1], [2], [0, 0, 0, 1, 1, 2], [0], [0]>} : vector<2x8x8xf32>, vector<2x8x8xf32>, vector<2x8x8xf32> -> vector<2x8x8xf32>
    "tpu.trace_stop"() : () -> ()
    %110 = vector.shape_cast %109 : vector<2x8x8xf32> to vector<16x8xf32>
    %111 = vector.extract_strided_slice %39 {offsets = [16, 0], sizes = [8, 32], strides = [1, 1]} : vector<32x32xf32> to vector<8x32xf32>
    %cst_43 = arith.constant dense<0.000000e+00> : vector<16x32xf32>
    %112 = tpu.matmul %110, %111, %cst_43 {dimension_numbers = #tpu.dot_dimension_numbers<[1], [0], [0], [1], [0, 0, 1, 1], [], []>} : vector<16x8xf32>, vector<8x32xf32>, vector<16x32xf32> -> vector<16x32xf32>
    %113 = arith.addf %88, %112 : vector<16x32xf32>
    %114 = vector.extract_strided_slice %37 {offsets = [0, 24], sizes = [16, 8], strides = [1, 1]} : vector<16x96xf32> to vector<16x8xf32>
    %cst_44 = arith.constant 0.353553385 : f32
    %115 = vector.broadcast %cst_44 : f32 to vector<16x8xf32>
    %116 = arith.mulf %114, %115 : vector<16x8xf32>
    %117 = vector.extract_strided_slice %37 {offsets = [0, 56], sizes = [16, 8], strides = [1, 1]} : vector<16x96xf32> to vector<16x8xf32>
    %118 = vector.extract_strided_slice %37 {offsets = [0, 88], sizes = [16, 8], strides = [1, 1]} : vector<16x96xf32> to vector<16x8xf32>
    %119 = vector.shape_cast %116 : vector<16x8xf32> to vector<2x8x8xf32>
    %120 = vector.shape_cast %117 : vector<16x8xf32> to vector<2x8x8xf32>
    %121 = vector.shape_cast %118 : vector<16x8xf32> to vector<2x8x8xf32>
    "tpu.trace_start"() <{level = 10 : i32, message = "bqd,bkd->bqk"}> : () -> ()
    %cst_45 = arith.constant dense<0.000000e+00> : vector<2x8x8xf32>
    %122 = tpu.matmul %119, %120, %cst_45 {dimension_numbers = #tpu.dot_dimension_numbers<[2], [2], [1], [1], [0, 0, 0, 1, 1, 1], [0], [0]>} : vector<2x8x8xf32>, vector<2x8x8xf32>, vector<2x8x8xf32> -> vector<2x8x8xf32>
    "tpu.trace_stop"() : () -> ()
    %123 = vector.broadcast %4 : vector<2x1x8xf32> to vector<2x8x8xf32>
    %124 = arith.addf %122, %123 : vector<2x8x8xf32>
    %cst_46 = arith.constant dense<0xFF800000> : vector<2x8xf32>
    %125 = vector.multi_reduction <maximumf>, %124, %cst_46 [2] : vector<2x8x8xf32> to vector<2x8xf32>
    %126 = vector.shape_cast %125 : vector<2x8xf32> to vector<2x8x1xf32>
    %127 = vector.broadcast %126 : vector<2x8x1xf32> to vector<2x8x8xf32>
    %128 = arith.subf %124, %127 : vector<2x8x8xf32>
    %129 = math.exp %128 : vector<2x8x8xf32>
    %cst_47 = arith.constant dense<0.000000e+00> : vector<2x8xf32>
    %130 = vector.multi_reduction <add>, %129, %cst_47 [2] : vector<2x8x8xf32> to vector<2x8xf32>
    %131 = vector.shape_cast %130 : vector<2x8xf32> to vector<2x8x1xf32>
    %132 = vector.broadcast %131 : vector<2x8x1xf32> to vector<2x8x8xf32>
    %133 = arith.divf %129, %132 : vector<2x8x8xf32>
    "tpu.trace_start"() <{level = 10 : i32, message = "bqk,bkd->bqd"}> : () -> ()
    %cst_48 = arith.constant dense<0.000000e+00> : vector<2x8x8xf32>
    %134 = tpu.matmul %133, %121, %cst_48 {dimension_numbers = #tpu.dot_dimension_numbers<[2], [1], [1], [2], [0, 0, 0, 1, 1, 2], [0], [0]>} : vector<2x8x8xf32>, vector<2x8x8xf32>, vector<2x8x8xf32> -> vector<2x8x8xf32>
    "tpu.trace_stop"() : () -> ()
    %135 = vector.shape_cast %134 : vector<2x8x8xf32> to vector<16x8xf32>
    %136 = vector.extract_strided_slice %39 {offsets = [24, 0], sizes = [8, 32], strides = [1, 1]} : vector<32x32xf32> to vector<8x32xf32>
    %cst_49 = arith.constant dense<0.000000e+00> : vector<16x32xf32>
    %137 = tpu.matmul %135, %136, %cst_49 {dimension_numbers = #tpu.dot_dimension_numbers<[1], [0], [0], [1], [0, 0, 1, 1], [], []>} : vector<16x8xf32>, vector<8x32xf32>, vector<16x32xf32> -> vector<16x32xf32>
    %138 = arith.addf %113, %137 : vector<16x32xf32>
    %cst_50 = arith.constant 1.000000e+00 : f32
    %139 = vector.broadcast %cst_50 : f32 to vector<16x32xf32>
    %140 = arith.mulf %3, %139 : vector<16x32xf32>
    %c0_51 = arith.constant 0 : index
    %c0_52 = arith.constant 0 : index
    %c0_53 = arith.constant 0 : index
    %141 = vector.load %arg9[%c0_51, %c0_52, %c0_53] : memref<2x1x32xf32, #tpu.memory_space<vmem>>, vector<1x1x32xf32>
    %142 = vector.shape_cast %141 : vector<1x1x32xf32> to vector<1x32xf32>
    %143 = vector.broadcast %142 : vector<1x32xf32> to vector<16x32xf32>
    %144 = arith.addf %138, %143 : vector<16x32xf32>
    %145 = arith.addf %140, %144 : vector<16x32xf32>
    %c0_54 = arith.constant 0 : index
    %c0_55 = arith.constant 0 : index
    %c0_56 = arith.constant 0 : index
    %146 = vector.load %arg10[%c0_54, %c0_55, %c0_56] : memref<2x1x32xf32, #tpu.memory_space<vmem>>, vector<1x1x32xf32>
    %147 = vector.shape_cast %146 : vector<1x1x32xf32> to vector<1x32xf32>
    %c0_57 = arith.constant 0 : index
    %c0_58 = arith.constant 0 : index
    %c0_59 = arith.constant 0 : index
    %148 = vector.load %arg11[%c0_57, %c0_58, %c0_59] : memref<2x1x32xf32, #tpu.memory_space<vmem>>, vector<1x1x32xf32>
    %149 = vector.shape_cast %148 : vector<1x1x32xf32> to vector<1x32xf32>
    %cst_60 = arith.constant dense<0.000000e+00> : vector<16xf32>
    %150 = vector.multi_reduction <add>, %145, %cst_60 [1] : vector<16x32xf32> to vector<16xf32>
    %151 = vector.shape_cast %150 : vector<16xf32> to vector<16x1xf32>
    %cst_61 = arith.constant 3.200000e+01 : f32
    %152 = vector.broadcast %cst_61 : f32 to vector<16x1xf32>
    %153 = arith.divf %151, %152 : vector<16x1xf32>
    %154 = vector.broadcast %153 : vector<16x1xf32> to vector<16x32xf32>
    %155 = arith.subf %145, %154 : vector<16x32xf32>
    %156 = arith.mulf %155, %155 : vector<16x32xf32>
    %cst_62 = arith.constant dense<0.000000e+00> : vector<16xf32>
    %157 = vector.multi_reduction <add>, %156, %cst_62 [1] : vector<16x32xf32> to vector<16xf32>
    %158 = vector.shape_cast %157 : vector<16xf32> to vector<16x1xf32>
    %cst_63 = arith.constant 3.200000e+01 : f32
    %159 = vector.broadcast %cst_63 : f32 to vector<16x1xf32>
    %160 = arith.divf %158, %159 : vector<16x1xf32>
    %161 = vector.broadcast %153 : vector<16x1xf32> to vector<16x32xf32>
    %162 = arith.subf %145, %161 : vector<16x32xf32>
    %cst_64 = arith.constant 9.99999974E-6 : f32
    %163 = vector.broadcast %cst_64 : f32 to vector<16x1xf32>
    %164 = arith.addf %160, %163 : vector<16x1xf32>
    %165 = math.rsqrt %164 : vector<16x1xf32>
    %166 = vector.broadcast %165 : vector<16x1xf32> to vector<16x32xf32>
    %167 = arith.mulf %162, %166 : vector<16x32xf32>
    %168 = vector.broadcast %147 : vector<1x32xf32> to vector<16x32xf32>
    %169 = arith.mulf %167, %168 : vector<16x32xf32>
    %170 = vector.broadcast %149 : vector<1x32xf32> to vector<16x32xf32>
    %171 = arith.addf %169, %170 : vector<16x32xf32>
    %c0_65 = arith.constant 0 : index
    %c0_66 = arith.constant 0 : index
    %c0_67 = arith.constant 0 : index
    %172 = vector.load %arg12[%c0_65, %c0_66, %c0_67] : memref<2x32x64xf32, #tpu.memory_space<vmem>>, vector<1x32x64xf32>
    %173 = vector.shape_cast %172 : vector<1x32x64xf32> to vector<32x64xf32>
    %cst_68 = arith.constant dense<0.000000e+00> : vector<16x64xf32>
    %174 = tpu.matmul %171, %173, %cst_68 {dimension_numbers = #tpu.dot_dimension_numbers<[1], [0], [0], [1], [0, 0, 1, 1], [], []>} : vector<16x32xf32>, vector<32x64xf32>, vector<16x64xf32> -> vector<16x64xf32>
    %c0_69 = arith.constant 0 : index
    %c0_70 = arith.constant 0 : index
    %c0_71 = arith.constant 0 : index
    %175 = vector.load %arg13[%c0_69, %c0_70, %c0_71] : memref<2x1x64xf32, #tpu.memory_space<vmem>>, vector<1x1x64xf32>
    %176 = vector.shape_cast %175 : vector<1x1x64xf32> to vector<1x64xf32>
    %177 = vector.broadcast %176 : vector<1x64xf32> to vector<16x64xf32>
    %178 = arith.addf %174, %177 : vector<16x64xf32>
    %cst_72 = arith.constant 0.000000e+00 : f32
    %179 = vector.broadcast %cst_72 : f32 to vector<16x64xf32>
    %180 = arith.maximumf %178, %179 : vector<16x64xf32>
    %c0_73 = arith.constant 0 : index
    %c0_74 = arith.constant 0 : index
    %c0_75 = arith.constant 0 : index
    %181 = vector.load %arg14[%c0_73, %c0_74, %c0_75] : memref<2x64x32xf32, #tpu.memory_space<vmem>>, vector<1x64x32xf32>
    %182 = vector.shape_cast %181 : vector<1x64x32xf32> to vector<64x32xf32>
    %cst_76 = arith.constant dense<0.000000e+00> : vector<16x32xf32>
    %183 = tpu.matmul %180, %182, %cst_76 {dimension_numbers = #tpu.dot_dimension_numbers<[1], [0], [0], [1], [0, 0, 1, 1], [], []>} : vector<16x64xf32>, vector<64x32xf32>, vector<16x32xf32> -> vector<16x32xf32>
    %c0_77 = arith.constant 0 : index
    %c0_78 = arith.constant 0 : index
    %c0_79 = arith.constant 0 : index
    %184 = vector.load %arg15[%c0_77, %c0_78, %c0_79] : memref<2x1x32xf32, #tpu.memory_space<vmem>>, vector<1x1x32xf32>
    %185 = vector.shape_cast %184 : vector<1x1x32xf32> to vector<1x32xf32>
    %186 = vector.broadcast %185 : vector<1x32xf32> to vector<16x32xf32>
    %187 = arith.addf %183, %186 : vector<16x32xf32>
    %cst_80 = arith.constant 1.000000e+00 : f32
    %188 = vector.broadcast %cst_80 : f32 to vector<16x32xf32>
    %189 = arith.mulf %145, %188 : vector<16x32xf32>
    %190 = arith.addf %189, %187 : vector<16x32xf32>
    %c1 = arith.constant 1 : index
    %c0_81 = arith.constant 0 : index
    %c0_82 = arith.constant 0 : index
    %191 = vector.load %arg4[%c1, %c0_81, %c0_82] : memref<2x1x32xf32, #tpu.memory_space<vmem>>, vector<1x1x32xf32>
    %192 = vector.shape_cast %191 : vector<1x1x32xf32> to vector<1x32xf32>
    %c1_83 = arith.constant 1 : index
    %c0_84 = arith.constant 0 : index
    %c0_85 = arith.constant 0 : index
    %193 = vector.load %arg5[%c1_83, %c0_84, %c0_85] : memref<2x1x32xf32, #tpu.memory_space<vmem>>, vector<1x1x32xf32>
    %194 = vector.shape_cast %193 : vector<1x1x32xf32> to vector<1x32xf32>
    %cst_86 = arith.constant dense<0.000000e+00> : vector<16xf32>
    %195 = vector.multi_reduction <add>, %190, %cst_86 [1] : vector<16x32xf32> to vector<16xf32>
    %196 = vector.shape_cast %195 : vector<16xf32> to vector<16x1xf32>
    %cst_87 = arith.constant 3.200000e+01 : f32
    %197 = vector.broadcast %cst_87 : f32 to vector<16x1xf32>
    %198 = arith.divf %196, %197 : vector<16x1xf32>
    %199 = vector.broadcast %198 : vector<16x1xf32> to vector<16x32xf32>
    %200 = arith.subf %190, %199 : vector<16x32xf32>
    %201 = arith.mulf %200, %200 : vector<16x32xf32>
    %cst_88 = arith.constant dense<0.000000e+00> : vector<16xf32>
    %202 = vector.multi_reduction <add>, %201, %cst_88 [1] : vector<16x32xf32> to vector<16xf32>
    %203 = vector.shape_cast %202 : vector<16xf32> to vector<16x1xf32>
    %cst_89 = arith.constant 3.200000e+01 : f32
    %204 = vector.broadcast %cst_89 : f32 to vector<16x1xf32>
    %205 = arith.divf %203, %204 : vector<16x1xf32>
    %206 = vector.broadcast %198 : vector<16x1xf32> to vector<16x32xf32>
    %207 = arith.subf %190, %206 : vector<16x32xf32>
    %cst_90 = arith.constant 9.99999974E-6 : f32
    %208 = vector.broadcast %cst_90 : f32 to vector<16x1xf32>
    %209 = arith.addf %205, %208 : vector<16x1xf32>
    %210 = math.rsqrt %209 : vector<16x1xf32>
    %211 = vector.broadcast %210 : vector<16x1xf32> to vector<16x32xf32>
    %212 = arith.mulf %207, %211 : vector<16x32xf32>
    %213 = vector.broadcast %192 : vector<1x32xf32> to vector<16x32xf32>
    %214 = arith.mulf %212, %213 : vector<16x32xf32>
    %215 = vector.broadcast %194 : vector<1x32xf32> to vector<16x32xf32>
    %216 = arith.addf %214, %215 : vector<16x32xf32>
    %c1_91 = arith.constant 1 : index
    %c0_92 = arith.constant 0 : index
    %c0_93 = arith.constant 0 : index
    %217 = vector.load %arg6[%c1_91, %c0_92, %c0_93] : memref<2x32x96xf32, #tpu.memory_space<vmem>>, vector<1x32x96xf32>
    %218 = vector.shape_cast %217 : vector<1x32x96xf32> to vector<32x96xf32>
    %cst_94 = arith.constant dense<0.000000e+00> : vector<16x96xf32>
    %219 = tpu.matmul %216, %218, %cst_94 {dimension_numbers = #tpu.dot_dimension_numbers<[1], [0], [0], [1], [0, 0, 1, 1], [], []>} : vector<16x32xf32>, vector<32x96xf32>, vector<16x96xf32> -> vector<16x96xf32>
    %c1_95 = arith.constant 1 : index
    %c0_96 = arith.constant 0 : index
    %c0_97 = arith.constant 0 : index
    %220 = vector.load %arg7[%c1_95, %c0_96, %c0_97] : memref<2x1x96xf32, #tpu.memory_space<vmem>>, vector<1x1x96xf32>
    %221 = vector.shape_cast %220 : vector<1x1x96xf32> to vector<1x96xf32>
    %222 = vector.broadcast %221 : vector<1x96xf32> to vector<16x96xf32>
    %223 = arith.addf %219, %222 : vector<16x96xf32>
    %c1_98 = arith.constant 1 : index
    %c0_99 = arith.constant 0 : index
    %c0_100 = arith.constant 0 : index
    %224 = vector.load %arg8[%c1_98, %c0_99, %c0_100] : memref<2x32x32xf32, #tpu.memory_space<vmem>>, vector<1x32x32xf32>
    %225 = vector.shape_cast %224 : vector<1x32x32xf32> to vector<32x32xf32>
    %226 = vector.extract_strided_slice %223 {offsets = [0, 0], sizes = [16, 8], strides = [1, 1]} : vector<16x96xf32> to vector<16x8xf32>
    %cst_101 = arith.constant 0.353553385 : f32
    %227 = vector.broadcast %cst_101 : f32 to vector<16x8xf32>
    %228 = arith.mulf %226, %227 : vector<16x8xf32>
    %229 = vector.extract_strided_slice %223 {offsets = [0, 32], sizes = [16, 8], strides = [1, 1]} : vector<16x96xf32> to vector<16x8xf32>
    %230 = vector.extract_strided_slice %223 {offsets = [0, 64], sizes = [16, 8], strides = [1, 1]} : vector<16x96xf32> to vector<16x8xf32>
    %231 = vector.shape_cast %228 : vector<16x8xf32> to vector<2x8x8xf32>
    %232 = vector.shape_cast %229 : vector<16x8xf32> to vector<2x8x8xf32>
    %233 = vector.shape_cast %230 : vector<16x8xf32> to vector<2x8x8xf32>
    "tpu.trace_start"() <{level = 10 : i32, message = "bqd,bkd->bqk"}> : () -> ()
    %cst_102 = arith.constant dense<0.000000e+00> : vector<2x8x8xf32>
    %234 = tpu.matmul %231, %232, %cst_102 {dimension_numbers = #tpu.dot_dimension_numbers<[2], [2], [1], [1], [0, 0, 0, 1, 1, 1], [0], [0]>} : vector<2x8x8xf32>, vector<2x8x8xf32>, vector<2x8x8xf32> -> vector<2x8x8xf32>
    "tpu.trace_stop"() : () -> ()
    %235 = vector.broadcast %4 : vector<2x1x8xf32> to vector<2x8x8xf32>
    %236 = arith.addf %234, %235 : vector<2x8x8xf32>
    %cst_103 = arith.constant dense<0xFF800000> : vector<2x8xf32>
    %237 = vector.multi_reduction <maximumf>, %236, %cst_103 [2] : vector<2x8x8xf32> to vector<2x8xf32>
    %238 = vector.shape_cast %237 : vector<2x8xf32> to vector<2x8x1xf32>
    %239 = vector.broadcast %238 : vector<2x8x1xf32> to vector<2x8x8xf32>
    %240 = arith.subf %236, %239 : vector<2x8x8xf32>
    %241 = math.exp %240 : vector<2x8x8xf32>
    %cst_104 = arith.constant dense<0.000000e+00> : vector<2x8xf32>
    %242 = vector.multi_reduction <add>, %241, %cst_104 [2] : vector<2x8x8xf32> to vector<2x8xf32>
    %243 = vector.shape_cast %242 : vector<2x8xf32> to vector<2x8x1xf32>
    %244 = vector.broadcast %243 : vector<2x8x1xf32> to vector<2x8x8xf32>
    %245 = arith.divf %241, %244 : vector<2x8x8xf32>
    "tpu.trace_start"() <{level = 10 : i32, message = "bqk,bkd->bqd"}> : () -> ()
    %cst_105 = arith.constant dense<0.000000e+00> : vector<2x8x8xf32>
    %246 = tpu.matmul %245, %233, %cst_105 {dimension_numbers = #tpu.dot_dimension_numbers<[2], [1], [1], [2], [0, 0, 0, 1, 1, 2], [0], [0]>} : vector<2x8x8xf32>, vector<2x8x8xf32>, vector<2x8x8xf32> -> vector<2x8x8xf32>
    "tpu.trace_stop"() : () -> ()
    %247 = vector.shape_cast %246 : vector<2x8x8xf32> to vector<16x8xf32>
    %248 = vector.extract_strided_slice %225 {offsets = [0, 0], sizes = [8, 32], strides = [1, 1]} : vector<32x32xf32> to vector<8x32xf32>
    %cst_106 = arith.constant dense<0.000000e+00> : vector<16x32xf32>
    %249 = tpu.matmul %247, %248, %cst_106 {dimension_numbers = #tpu.dot_dimension_numbers<[1], [0], [0], [1], [0, 0, 1, 1], [], []>} : vector<16x8xf32>, vector<8x32xf32>, vector<16x32xf32> -> vector<16x32xf32>
    %250 = vector.extract_strided_slice %223 {offsets = [0, 8], sizes = [16, 8], strides = [1, 1]} : vector<16x96xf32> to vector<16x8xf32>
    %cst_107 = arith.constant 0.353553385 : f32
    %251 = vector.broadcast %cst_107 : f32 to vector<16x8xf32>
    %252 = arith.mulf %250, %251 : vector<16x8xf32>
    %253 = vector.extract_strided_slice %223 {offsets = [0, 40], sizes = [16, 8], strides = [1, 1]} : vector<16x96xf32> to vector<16x8xf32>
    %254 = vector.extract_strided_slice %223 {offsets = [0, 72], sizes = [16, 8], strides = [1, 1]} : vector<16x96xf32> to vector<16x8xf32>
    %255 = vector.shape_cast %252 : vector<16x8xf32> to vector<2x8x8xf32>
    %256 = vector.shape_cast %253 : vector<16x8xf32> to vector<2x8x8xf32>
    %257 = vector.shape_cast %254 : vector<16x8xf32> to vector<2x8x8xf32>
    "tpu.trace_start"() <{level = 10 : i32, message = "bqd,bkd->bqk"}> : () -> ()
    %cst_108 = arith.constant dense<0.000000e+00> : vector<2x8x8xf32>
    %258 = tpu.matmul %255, %256, %cst_108 {dimension_numbers = #tpu.dot_dimension_numbers<[2], [2], [1], [1], [0, 0, 0, 1, 1, 1], [0], [0]>} : vector<2x8x8xf32>, vector<2x8x8xf32>, vector<2x8x8xf32> -> vector<2x8x8xf32>
    "tpu.trace_stop"() : () -> ()
    %259 = vector.broadcast %4 : vector<2x1x8xf32> to vector<2x8x8xf32>
    %260 = arith.addf %258, %259 : vector<2x8x8xf32>
    %cst_109 = arith.constant dense<0xFF800000> : vector<2x8xf32>
    %261 = vector.multi_reduction <maximumf>, %260, %cst_109 [2] : vector<2x8x8xf32> to vector<2x8xf32>
    %262 = vector.shape_cast %261 : vector<2x8xf32> to vector<2x8x1xf32>
    %263 = vector.broadcast %262 : vector<2x8x1xf32> to vector<2x8x8xf32>
    %264 = arith.subf %260, %263 : vector<2x8x8xf32>
    %265 = math.exp %264 : vector<2x8x8xf32>
    %cst_110 = arith.constant dense<0.000000e+00> : vector<2x8xf32>
    %266 = vector.multi_reduction <add>, %265, %cst_110 [2] : vector<2x8x8xf32> to vector<2x8xf32>
    %267 = vector.shape_cast %266 : vector<2x8xf32> to vector<2x8x1xf32>
    %268 = vector.broadcast %267 : vector<2x8x1xf32> to vector<2x8x8xf32>
    %269 = arith.divf %265, %268 : vector<2x8x8xf32>
    "tpu.trace_start"() <{level = 10 : i32, message = "bqk,bkd->bqd"}> : () -> ()
    %cst_111 = arith.constant dense<0.000000e+00> : vector<2x8x8xf32>
    %270 = tpu.matmul %269, %257, %cst_111 {dimension_numbers = #tpu.dot_dimension_numbers<[2], [1], [1], [2], [0, 0, 0, 1, 1, 2], [0], [0]>} : vector<2x8x8xf32>, vector<2x8x8xf32>, vector<2x8x8xf32> -> vector<2x8x8xf32>
    "tpu.trace_stop"() : () -> ()
    %271 = vector.shape_cast %270 : vector<2x8x8xf32> to vector<16x8xf32>
    %272 = vector.extract_strided_slice %225 {offsets = [8, 0], sizes = [8, 32], strides = [1, 1]} : vector<32x32xf32> to vector<8x32xf32>
    %cst_112 = arith.constant dense<0.000000e+00> : vector<16x32xf32>
    %273 = tpu.matmul %271, %272, %cst_112 {dimension_numbers = #tpu.dot_dimension_numbers<[1], [0], [0], [1], [0, 0, 1, 1], [], []>} : vector<16x8xf32>, vector<8x32xf32>, vector<16x32xf32> -> vector<16x32xf32>
    %274 = arith.addf %249, %273 : vector<16x32xf32>
    %275 = vector.extract_strided_slice %223 {offsets = [0, 16], sizes = [16, 8], strides = [1, 1]} : vector<16x96xf32> to vector<16x8xf32>
    %cst_113 = arith.constant 0.353553385 : f32
    %276 = vector.broadcast %cst_113 : f32 to vector<16x8xf32>
    %277 = arith.mulf %275, %276 : vector<16x8xf32>
    %278 = vector.extract_strided_slice %223 {offsets = [0, 48], sizes = [16, 8], strides = [1, 1]} : vector<16x96xf32> to vector<16x8xf32>
    %279 = vector.extract_strided_slice %223 {offsets = [0, 80], sizes = [16, 8], strides = [1, 1]} : vector<16x96xf32> to vector<16x8xf32>
    %280 = vector.shape_cast %277 : vector<16x8xf32> to vector<2x8x8xf32>
    %281 = vector.shape_cast %278 : vector<16x8xf32> to vector<2x8x8xf32>
    %282 = vector.shape_cast %279 : vector<16x8xf32> to vector<2x8x8xf32>
    "tpu.trace_start"() <{level = 10 : i32, message = "bqd,bkd->bqk"}> : () -> ()
    %cst_114 = arith.constant dense<0.000000e+00> : vector<2x8x8xf32>
    %283 = tpu.matmul %280, %281, %cst_114 {dimension_numbers = #tpu.dot_dimension_numbers<[2], [2], [1], [1], [0, 0, 0, 1, 1, 1], [0], [0]>} : vector<2x8x8xf32>, vector<2x8x8xf32>, vector<2x8x8xf32> -> vector<2x8x8xf32>
    "tpu.trace_stop"() : () -> ()
    %284 = vector.broadcast %4 : vector<2x1x8xf32> to vector<2x8x8xf32>
    %285 = arith.addf %283, %284 : vector<2x8x8xf32>
    %cst_115 = arith.constant dense<0xFF800000> : vector<2x8xf32>
    %286 = vector.multi_reduction <maximumf>, %285, %cst_115 [2] : vector<2x8x8xf32> to vector<2x8xf32>
    %287 = vector.shape_cast %286 : vector<2x8xf32> to vector<2x8x1xf32>
    %288 = vector.broadcast %287 : vector<2x8x1xf32> to vector<2x8x8xf32>
    %289 = arith.subf %285, %288 : vector<2x8x8xf32>
    %290 = math.exp %289 : vector<2x8x8xf32>
    %cst_116 = arith.constant dense<0.000000e+00> : vector<2x8xf32>
    %291 = vector.multi_reduction <add>, %290, %cst_116 [2] : vector<2x8x8xf32> to vector<2x8xf32>
    %292 = vector.shape_cast %291 : vector<2x8xf32> to vector<2x8x1xf32>
    %293 = vector.broadcast %292 : vector<2x8x1xf32> to vector<2x8x8xf32>
    %294 = arith.divf %290, %293 : vector<2x8x8xf32>
    "tpu.trace_start"() <{level = 10 : i32, message = "bqk,bkd->bqd"}> : () -> ()
    %cst_117 = arith.constant dense<0.000000e+00> : vector<2x8x8xf32>
    %295 = tpu.matmul %294, %282, %cst_117 {dimension_numbers = #tpu.dot_dimension_numbers<[2], [1], [1], [2], [0, 0, 0, 1, 1, 2], [0], [0]>} : vector<2x8x8xf32>, vector<2x8x8xf32>, vector<2x8x8xf32> -> vector<2x8x8xf32>
    "tpu.trace_stop"() : () -> ()
    %296 = vector.shape_cast %295 : vector<2x8x8xf32> to vector<16x8xf32>
    %297 = vector.extract_strided_slice %225 {offsets = [16, 0], sizes = [8, 32], strides = [1, 1]} : vector<32x32xf32> to vector<8x32xf32>
    %cst_118 = arith.constant dense<0.000000e+00> : vector<16x32xf32>
    %298 = tpu.matmul %296, %297, %cst_118 {dimension_numbers = #tpu.dot_dimension_numbers<[1], [0], [0], [1], [0, 0, 1, 1], [], []>} : vector<16x8xf32>, vector<8x32xf32>, vector<16x32xf32> -> vector<16x32xf32>
    %299 = arith.addf %274, %298 : vector<16x32xf32>
    %300 = vector.extract_strided_slice %223 {offsets = [0, 24], sizes = [16, 8], strides = [1, 1]} : vector<16x96xf32> to vector<16x8xf32>
    %cst_119 = arith.constant 0.353553385 : f32
    %301 = vector.broadcast %cst_119 : f32 to vector<16x8xf32>
    %302 = arith.mulf %300, %301 : vector<16x8xf32>
    %303 = vector.extract_strided_slice %223 {offsets = [0, 56], sizes = [16, 8], strides = [1, 1]} : vector<16x96xf32> to vector<16x8xf32>
    %304 = vector.extract_strided_slice %223 {offsets = [0, 88], sizes = [16, 8], strides = [1, 1]} : vector<16x96xf32> to vector<16x8xf32>
    %305 = vector.shape_cast %302 : vector<16x8xf32> to vector<2x8x8xf32>
    %306 = vector.shape_cast %303 : vector<16x8xf32> to vector<2x8x8xf32>
    %307 = vector.shape_cast %304 : vector<16x8xf32> to vector<2x8x8xf32>
    "tpu.trace_start"() <{level = 10 : i32, message = "bqd,bkd->bqk"}> : () -> ()
    %cst_120 = arith.constant dense<0.000000e+00> : vector<2x8x8xf32>
    %308 = tpu.matmul %305, %306, %cst_120 {dimension_numbers = #tpu.dot_dimension_numbers<[2], [2], [1], [1], [0, 0, 0, 1, 1, 1], [0], [0]>} : vector<2x8x8xf32>, vector<2x8x8xf32>, vector<2x8x8xf32> -> vector<2x8x8xf32>
    "tpu.trace_stop"() : () -> ()
    %309 = vector.broadcast %4 : vector<2x1x8xf32> to vector<2x8x8xf32>
    %310 = arith.addf %308, %309 : vector<2x8x8xf32>
    %cst_121 = arith.constant dense<0xFF800000> : vector<2x8xf32>
    %311 = vector.multi_reduction <maximumf>, %310, %cst_121 [2] : vector<2x8x8xf32> to vector<2x8xf32>
    %312 = vector.shape_cast %311 : vector<2x8xf32> to vector<2x8x1xf32>
    %313 = vector.broadcast %312 : vector<2x8x1xf32> to vector<2x8x8xf32>
    %314 = arith.subf %310, %313 : vector<2x8x8xf32>
    %315 = math.exp %314 : vector<2x8x8xf32>
    %cst_122 = arith.constant dense<0.000000e+00> : vector<2x8xf32>
    %316 = vector.multi_reduction <add>, %315, %cst_122 [2] : vector<2x8x8xf32> to vector<2x8xf32>
    %317 = vector.shape_cast %316 : vector<2x8xf32> to vector<2x8x1xf32>
    %318 = vector.broadcast %317 : vector<2x8x1xf32> to vector<2x8x8xf32>
    %319 = arith.divf %315, %318 : vector<2x8x8xf32>
    "tpu.trace_start"() <{level = 10 : i32, message = "bqk,bkd->bqd"}> : () -> ()
    %cst_123 = arith.constant dense<0.000000e+00> : vector<2x8x8xf32>
    %320 = tpu.matmul %319, %307, %cst_123 {dimension_numbers = #tpu.dot_dimension_numbers<[2], [1], [1], [2], [0, 0, 0, 1, 1, 2], [0], [0]>} : vector<2x8x8xf32>, vector<2x8x8xf32>, vector<2x8x8xf32> -> vector<2x8x8xf32>
    "tpu.trace_stop"() : () -> ()
    %321 = vector.shape_cast %320 : vector<2x8x8xf32> to vector<16x8xf32>
    %322 = vector.extract_strided_slice %225 {offsets = [24, 0], sizes = [8, 32], strides = [1, 1]} : vector<32x32xf32> to vector<8x32xf32>
    %cst_124 = arith.constant dense<0.000000e+00> : vector<16x32xf32>
    %323 = tpu.matmul %321, %322, %cst_124 {dimension_numbers = #tpu.dot_dimension_numbers<[1], [0], [0], [1], [0, 0, 1, 1], [], []>} : vector<16x8xf32>, vector<8x32xf32>, vector<16x32xf32> -> vector<16x32xf32>
    %324 = arith.addf %299, %323 : vector<16x32xf32>
    %cst_125 = arith.constant 1.000000e+00 : f32
    %325 = vector.broadcast %cst_125 : f32 to vector<16x32xf32>
    %326 = arith.mulf %190, %325 : vector<16x32xf32>
    %c1_126 = arith.constant 1 : index
    %c0_127 = arith.constant 0 : index
    %c0_128 = arith.constant 0 : index
    %327 = vector.load %arg9[%c1_126, %c0_127, %c0_128] : memref<2x1x32xf32, #tpu.memory_space<vmem>>, vector<1x1x32xf32>
    %328 = vector.shape_cast %327 : vector<1x1x32xf32> to vector<1x32xf32>
    %329 = vector.broadcast %328 : vector<1x32xf32> to vector<16x32xf32>
    %330 = arith.addf %324, %329 : vector<16x32xf32>
    %331 = arith.addf %326, %330 : vector<16x32xf32>
    %c1_129 = arith.constant 1 : index
    %c0_130 = arith.constant 0 : index
    %c0_131 = arith.constant 0 : index
    %332 = vector.load %arg10[%c1_129, %c0_130, %c0_131] : memref<2x1x32xf32, #tpu.memory_space<vmem>>, vector<1x1x32xf32>
    %333 = vector.shape_cast %332 : vector<1x1x32xf32> to vector<1x32xf32>
    %c1_132 = arith.constant 1 : index
    %c0_133 = arith.constant 0 : index
    %c0_134 = arith.constant 0 : index
    %334 = vector.load %arg11[%c1_132, %c0_133, %c0_134] : memref<2x1x32xf32, #tpu.memory_space<vmem>>, vector<1x1x32xf32>
    %335 = vector.shape_cast %334 : vector<1x1x32xf32> to vector<1x32xf32>
    %cst_135 = arith.constant dense<0.000000e+00> : vector<16xf32>
    %336 = vector.multi_reduction <add>, %331, %cst_135 [1] : vector<16x32xf32> to vector<16xf32>
    %337 = vector.shape_cast %336 : vector<16xf32> to vector<16x1xf32>
    %cst_136 = arith.constant 3.200000e+01 : f32
    %338 = vector.broadcast %cst_136 : f32 to vector<16x1xf32>
    %339 = arith.divf %337, %338 : vector<16x1xf32>
    %340 = vector.broadcast %339 : vector<16x1xf32> to vector<16x32xf32>
    %341 = arith.subf %331, %340 : vector<16x32xf32>
    %342 = arith.mulf %341, %341 : vector<16x32xf32>
    %cst_137 = arith.constant dense<0.000000e+00> : vector<16xf32>
    %343 = vector.multi_reduction <add>, %342, %cst_137 [1] : vector<16x32xf32> to vector<16xf32>
    %344 = vector.shape_cast %343 : vector<16xf32> to vector<16x1xf32>
    %cst_138 = arith.constant 3.200000e+01 : f32
    %345 = vector.broadcast %cst_138 : f32 to vector<16x1xf32>
    %346 = arith.divf %344, %345 : vector<16x1xf32>
    %347 = vector.broadcast %339 : vector<16x1xf32> to vector<16x32xf32>
    %348 = arith.subf %331, %347 : vector<16x32xf32>
    %cst_139 = arith.constant 9.99999974E-6 : f32
    %349 = vector.broadcast %cst_139 : f32 to vector<16x1xf32>
    %350 = arith.addf %346, %349 : vector<16x1xf32>
    %351 = math.rsqrt %350 : vector<16x1xf32>
    %352 = vector.broadcast %351 : vector<16x1xf32> to vector<16x32xf32>
    %353 = arith.mulf %348, %352 : vector<16x32xf32>
    %354 = vector.broadcast %333 : vector<1x32xf32> to vector<16x32xf32>
    %355 = arith.mulf %353, %354 : vector<16x32xf32>
    %356 = vector.broadcast %335 : vector<1x32xf32> to vector<16x32xf32>
    %357 = arith.addf %355, %356 : vector<16x32xf32>
    %c1_140 = arith.constant 1 : index
    %c0_141 = arith.constant 0 : index
    %c0_142 = arith.constant 0 : index
    %358 = vector.load %arg12[%c1_140, %c0_141, %c0_142] : memref<2x32x64xf32, #tpu.memory_space<vmem>>, vector<1x32x64xf32>
    %359 = vector.shape_cast %358 : vector<1x32x64xf32> to vector<32x64xf32>
    %cst_143 = arith.constant dense<0.000000e+00> : vector<16x64xf32>
    %360 = tpu.matmul %357, %359, %cst_143 {dimension_numbers = #tpu.dot_dimension_numbers<[1], [0], [0], [1], [0, 0, 1, 1], [], []>} : vector<16x32xf32>, vector<32x64xf32>, vector<16x64xf32> -> vector<16x64xf32>
    %c1_144 = arith.constant 1 : index
    %c0_145 = arith.constant 0 : index
    %c0_146 = arith.constant 0 : index
    %361 = vector.load %arg13[%c1_144, %c0_145, %c0_146] : memref<2x1x64xf32, #tpu.memory_space<vmem>>, vector<1x1x64xf32>
    %362 = vector.shape_cast %361 : vector<1x1x64xf32> to vector<1x64xf32>
    %363 = vector.broadcast %362 : vector<1x64xf32> to vector<16x64xf32>
    %364 = arith.addf %360, %363 : vector<16x64xf32>
    %cst_147 = arith.constant 0.000000e+00 : f32
    %365 = vector.broadcast %cst_147 : f32 to vector<16x64xf32>
    %366 = arith.maximumf %364, %365 : vector<16x64xf32>
    %c1_148 = arith.constant 1 : index
    %c0_149 = arith.constant 0 : index
    %c0_150 = arith.constant 0 : index
    %367 = vector.load %arg14[%c1_148, %c0_149, %c0_150] : memref<2x64x32xf32, #tpu.memory_space<vmem>>, vector<1x64x32xf32>
    %368 = vector.shape_cast %367 : vector<1x64x32xf32> to vector<64x32xf32>
    %cst_151 = arith.constant dense<0.000000e+00> : vector<16x32xf32>
    %369 = tpu.matmul %366, %368, %cst_151 {dimension_numbers = #tpu.dot_dimension_numbers<[1], [0], [0], [1], [0, 0, 1, 1], [], []>} : vector<16x64xf32>, vector<64x32xf32>, vector<16x32xf32> -> vector<16x32xf32>
    %c1_152 = arith.constant 1 : index
    %c0_153 = arith.constant 0 : index
    %c0_154 = arith.constant 0 : index
    %370 = vector.load %arg15[%c1_152, %c0_153, %c0_154] : memref<2x1x32xf32, #tpu.memory_space<vmem>>, vector<1x1x32xf32>
    %371 = vector.shape_cast %370 : vector<1x1x32xf32> to vector<1x32xf32>
    %372 = vector.broadcast %371 : vector<1x32xf32> to vector<16x32xf32>
    %373 = arith.addf %369, %372 : vector<16x32xf32>
    %cst_155 = arith.constant 1.000000e+00 : f32
    %374 = vector.broadcast %cst_155 : f32 to vector<16x32xf32>
    %375 = arith.mulf %331, %374 : vector<16x32xf32>
    %376 = arith.addf %375, %373 : vector<16x32xf32>
    %c0_156 = arith.constant 0 : index
    %c0_157 = arith.constant 0 : index
    %377 = vector.load %arg16[%c0_156, %c0_157] : memref<1x32xf32, #tpu.memory_space<vmem>>, vector<1x32xf32>
    %c0_158 = arith.constant 0 : index
    %c0_159 = arith.constant 0 : index
    %378 = vector.load %arg17[%c0_158, %c0_159] : memref<1x32xf32, #tpu.memory_space<vmem>>, vector<1x32xf32>
    %cst_160 = arith.constant dense<0.000000e+00> : vector<16xf32>
    %379 = vector.multi_reduction <add>, %376, %cst_160 [1] : vector<16x32xf32> to vector<16xf32>
    %380 = vector.shape_cast %379 : vector<16xf32> to vector<16x1xf32>
    %cst_161 = arith.constant 3.200000e+01 : f32
    %381 = vector.broadcast %cst_161 : f32 to vector<16x1xf32>
    %382 = arith.divf %380, %381 : vector<16x1xf32>
    %383 = vector.broadcast %382 : vector<16x1xf32> to vector<16x32xf32>
    %384 = arith.subf %376, %383 : vector<16x32xf32>
    %385 = arith.mulf %384, %384 : vector<16x32xf32>
    %cst_162 = arith.constant dense<0.000000e+00> : vector<16xf32>
    %386 = vector.multi_reduction <add>, %385, %cst_162 [1] : vector<16x32xf32> to vector<16xf32>
    %387 = vector.shape_cast %386 : vector<16xf32> to vector<16x1xf32>
    %cst_163 = arith.constant 3.200000e+01 : f32
    %388 = vector.broadcast %cst_163 : f32 to vector<16x1xf32>
    %389 = arith.divf %387, %388 : vector<16x1xf32>
    %390 = vector.broadcast %382 : vector<16x1xf32> to vector<16x32xf32>
    %391 = arith.subf %376, %390 : vector<16x32xf32>
    %cst_164 = arith.constant 9.99999974E-6 : f32
    %392 = vector.broadcast %cst_164 : f32 to vector<16x1xf32>
    %393 = arith.addf %389, %392 : vector<16x1xf32>
    %394 = math.rsqrt %393 : vector<16x1xf32>
    %395 = vector.broadcast %394 : vector<16x1xf32> to vector<16x32xf32>
    %396 = arith.mulf %391, %395 : vector<16x32xf32>
    %397 = vector.broadcast %377 : vector<1x32xf32> to vector<16x32xf32>
    %398 = arith.mulf %396, %397 : vector<16x32xf32>
    %399 = vector.broadcast %378 : vector<1x32xf32> to vector<16x32xf32>
    %400 = arith.addf %398, %399 : vector<16x32xf32>
    %c0_165 = arith.constant 0 : index
    %c0_166 = arith.constant 0 : index
    %401 = vector.load %arg18[%c0_165, %c0_166] : memref<32x128xf32, #tpu.memory_space<vmem>>, vector<32x128xf32>
    %cst_167 = arith.constant dense<0.000000e+00> : vector<16x128xf32>
    %402 = tpu.matmul %400, %401, %cst_167 {dimension_numbers = #tpu.dot_dimension_numbers<[1], [0], [0], [1], [0, 0, 1, 1], [], []>} : vector<16x32xf32>, vector<32x128xf32>, vector<16x128xf32> -> vector<16x128xf32>
    %c0_168 = arith.constant 0 : index
    %c0_169 = arith.constant 0 : index
    %403 = vector.load %arg19[%c0_168, %c0_169] : memref<16x128xf32, #tpu.memory_space<vmem>>, vector<16x128xf32>
    tpu.vector_store %arg19[%c0_168, %c0_169], %402 {strides = array<i32>} : memref<16x128xf32, #tpu.memory_space<vmem>>, vector<16x128xf32>,
    return
  }
  func.func @transform_0(%arg0: i32) -> (i32, i32) {
    %c0_i32 = arith.constant 0 : i32
    %c0_i32_0 = arith.constant 0 : i32
    %c0_i32_1 = arith.constant 0 : i32
    return %c0_i32, %c0_i32_0 : i32, i32
  }
  func.func @transform_1(%arg0: i32) -> (i32, i32) {
    %c0_i32 = arith.constant 0 : i32
    %c0_i32_0 = arith.constant 0 : i32
    %c0_i32_1 = arith.constant 0 : i32
    return %c0_i32, %c0_i32_0 : i32, i32
  }
  func.func @transform_2(%arg0: i32) -> (i32, i32, i32) {
    %c0_i32 = arith.constant 0 : i32
    %c0_i32_0 = arith.constant 0 : i32
    %c0_i32_1 = arith.constant 0 : i32
    %c0_i32_2 = arith.constant 0 : i32
    return %c0_i32, %c0_i32_0, %c0_i32_1 : i32, i32, i32
  }
  func.func @transform_3(%arg0: i32) -> (i32, i32, i32) {
    %c0_i32 = arith.constant 0 : i32
    %c0_i32_0 = arith.constant 0 : i32
    %c0_i32_1 = arith.constant 0 : i32
    %c0_i32_2 = arith.constant 0 : i32
    return %c0_i32, %c0_i32_0, %c0_i32_1 : i32, i32, i32
  }
  func.func @transform_4(%arg0: i32) -> (i32, i32, i32) {
    %c0_i32 = arith.constant 0 : i32
    %c0_i32_0 = arith.constant 0 : i32
    %c0_i32_1 = arith.constant 0 : i32
    %c0_i32_2 = arith.constant 0 : i32
    return %c0_i32, %c0_i32_0, %c0_i32_1 : i32, i32, i32
  }
  func.func @transform_5(%arg0: i32) -> (i32, i32, i32) {
    %c0_i32 = arith.constant 0 : i32
    %c0_i32_0 = arith.constant 0 : i32
    %c0_i32_1 = arith.constant 0 : i32
    %c0_i32_2 = arith.constant 0 : i32
    return %c0_i32, %c0_i32_0, %c0_i32_1 : i32, i32, i32
  }
  func.func @transform_6(%arg0: i32) -> (i32, i32, i32) {
    %c0_i32 = arith.constant 0 : i32
    %c0_i32_0 = arith.constant 0 : i32
    %c0_i32_1 = arith.constant 0 : i32
    %c0_i32_2 = arith.constant 0 : i32
    return %c0_i32, %c0_i32_0, %c0_i32_1 : i32, i32, i32
  }
  func.func @transform_7(%arg0: i32) -> (i32, i32, i32) {
    %c0_i32 = arith.constant 0 : i32
    %c0_i32_0 = arith.constant 0 : i32
    %c0_i32_1 = arith.constant 0 : i32
    %c0_i32_2 = arith.constant 0 : i32
    return %c0_i32, %c0_i32_0, %c0_i32_1 : i32, i32, i32
  }
  func.func @transform_8(%arg0: i32) -> (i32, i32, i32) {
    %c0_i32 = arith.constant 0 : i32
    %c0_i32_0 = arith.constant 0 : i32
    %c0_i32_1 = arith.constant 0 : i32
    %c0_i32_2 = arith.constant 0 : i32
    return %c0_i32, %c0_i32_0, %c0_i32_1 : i32, i32, i32
  }
  func.func @transform_9(%arg0: i32) -> (i32, i32, i32) {
    %c0_i32 = arith.constant 0 : i32
    %c0_i32_0 = arith.constant 0 : i32
    %c0_i32_1 = arith.constant 0 : i32
    %c0_i32_2 = arith.constant 0 : i32
    return %c0_i32, %c0_i32_0, %c0_i32_1 : i32, i32, i32
  }
  func.func @transform_10(%arg0: i32) -> (i32, i32, i32) {
    %c0_i32 = arith.constant 0 : i32
    %c0_i32_0 = arith.constant 0 : i32
    %c0_i32_1 = arith.constant 0 : i32
    %c0_i32_2 = arith.constant 0 : i32
    return %c0_i32, %c0_i32_0, %c0_i32_1 : i32, i32, i32
  }
  func.func @transform_11(%arg0: i32) -> (i32, i32, i32) {
    %c0_i32 = arith.constant 0 : i32
    %c0_i32_0 = arith.constant 0 : i32
    %c0_i32_1 = arith.constant 0 : i32
    %c0_i32_2 = arith.constant 0 : i32
    return %c0_i32, %c0_i32_0, %c0_i32_1 : i32, i32, i32
  }
  func.func @transform_12(%arg0: i32) -> (i32, i32, i32) {
    %c0_i32 = arith.constant 0 : i32
    %c0_i32_0 = arith.constant 0 : i32
    %c0_i32_1 = arith.constant 0 : i32
    %c0_i32_2 = arith.constant 0 : i32
    return %c0_i32, %c0_i32_0, %c0_i32_1 : i32, i32, i32
  }
  func.func @transform_13(%arg0: i32) -> (i32, i32, i32) {
    %c0_i32 = arith.constant 0 : i32
    %c0_i32_0 = arith.constant 0 : i32
    %c0_i32_1 = arith.constant 0 : i32
    %c0_i32_2 = arith.constant 0 : i32
    return %c0_i32, %c0_i32_0, %c0_i32_1 : i32, i32, i32
  }
  func.func @transform_14(%arg0: i32) -> (i32, i32, i32) {
    %c0_i32 = arith.constant 0 : i32
    %c0_i32_0 = arith.constant 0 : i32
    %c0_i32_1 = arith.constant 0 : i32
    %c0_i32_2 = arith.constant 0 : i32
    return %c0_i32, %c0_i32_0, %c0_i32_1 : i32, i32, i32
  }
  func.func @transform_15(%arg0: i32) -> (i32, i32) {
    %c0_i32 = arith.constant 0 : i32
    %c0_i32_0 = arith.constant 0 : i32
    %c0_i32_1 = arith.constant 0 : i32
    return %c0_i32, %c0_i32_0 : i32, i32
  }
  func.func @transform_16(%arg0: i32) -> (i32, i32) {
    %c0_i32 = arith.constant 0 : i32
    %c0_i32_0 = arith.constant 0 : i32
    %c0_i32_1 = arith.constant 0 : i32
    return %c0_i32, %c0_i32_0 : i32, i32
  }
  func.func @transform_17(%arg0: i32) -> (i32, i32) {
    %c0_i32 = arith.constant 0 : i32
    %c0_i32_0 = arith.constant 0 : i32
    %c0_i32_1 = arith.constant 0 : i32
    return %c0_i32, %c0_i32_0 : i32, i32
  }
  func.func @transform_18(%arg0: i32) -> (i32, i32) {
    %c0_i32 = arith.constant 0 : i32
    %c0_i32_0 = arith.constant 0 : i32
    %c0_i32_1 = arith.constant 0 : i32
    return %c0_i32, %c0_i32_0 : i32, i32
  }
}

</mosaic_0001>

<bundles_post_ra>
// kernel: encoder_forward.1
= control target key start
LH: loop header
LB: loop body
LE: loop exit
PB: predicated region body
PF: predicated region fallthrough
CT: control target
= control target key end

     0   :  { %v2406_v0 = vmov 0   ;;  %vm79_vm0 = vcmask 261120   ;;  %v2407_v11 = vmov 32.0   ;;  %s2409_s23 = smov 88   ;;  %s2410_s24 = smov 120   ;;  %vm193_vm8 = vcmask 64512   ;;  %s3090_s1 = inlined_call_operand.vmem [shape: f32[16,1], index: 1, kind: input, shape index: {}]   ;;  %s3091_s0 = inlined_call_operand.vmem [shape: f32[16,32], index: 0, kind: input, shape index: {}]   ;;  %s3092_s3 = inlined_call_operand.vmem [shape: f32[2,1,32], index: 3, kind: input, shape index: {}]   ;;  %s3093_s4 = inlined_call_operand.vmem [shape: f32[2,1,32], index: 4, kind: input, shape index: {}]   ;;  %s3094_s6 = inlined_call_operand.vmem [shape: f32[2,1,96], index: 6, kind: input, shape index: {}]   ;;  %s3095_s5 = inlined_call_operand.vmem [shape: f32[2,32,96], index: 5, kind: input, shape index: {}]   ;;  %s3096_s2 = inlined_call_operand.vmem [shape: f32[2,1,8], index: 2, kind: input, shape index: {}]   ;;  %s3097_s7 = inlined_call_operand.vmem [shape: f32[2,32,32], index: 7, kind: input, shape index: {}]   ;;  %s3098_s8 = inlined_call_operand.vmem [shape: f32[2,1,32], index: 8, kind: input, shape index: {}]   ;;  %s3099_s9 = inlined_call_operand.vmem [shape: f32[2,1,32], index: 9, kind: input, shape index: {}]   ;;  %s3100_s10 = inlined_call_operand.vmem [shape: f32[2,1,32], index: 10, kind: input, shape index: {}]   ;;  %s3101_s12 = inlined_call_operand.vmem [shape: f32[2,1,64], index: 12, kind: input, shape index: {}]   ;;  %s3102_s11 = inlined_call_operand.vmem [shape: f32[2,32,64], index: 11, kind: input, shape index: {}]   ;;  %s3103_s13 = inlined_call_operand.vmem [shape: f32[2,64,32], index: 13, kind: input, shape index: {}]   ;;  %s3104_s14 = inlined_call_operand.vmem [shape: f32[2,1,32], index: 14, kind: input, shape index: {}]   ;;  %s3105_s15 = inlined_call_operand.vmem [shape: f32[1,32], index: 15, kind: input, shape index: {}]   ;;  %s3106_s16 = inlined_call_operand.vmem [shape: f32[1,32], index: 16, kind: input, shape index: {}]   ;;  %s3107_s17 = inlined_call_operand.vmem [shape: f32[32,128], index: 17, kind: input, shape index: {}]   ;;  %s3108_s18 = inlined_call_operand.vmem [shape: f32[16,128], index: 18, kind: output, shape index: {}]  }
   0x1   :  { %3126 = sst [smem:[#allocation2_spill]] %s3090_s1  ;;  %2297 = vset.pattern.permute.xlu0 %v2406_v0  ;;  %2318 = vrcp.f32 %v2407_v11  ;;  %v144_v28 = vld [vmem:[%s3095_s5 + $0x18] sm:$0xff]  ;;  %v143_v29 = vld [vmem:[%s3095_s5 + $0x10] sm:$0xff]  ;;  %v142_v30 = vld [vmem:[%s3095_s5 + $0x8] sm:$0xff]  ;;  %s2412_s30 = smov 56  }
   0x2   :  { %3127 = sst [smem:[#allocation3_spill]] %s3091_s0  ;;  %167 = vmatpush.msra.mxu0 %v144_v28  ;;  %v141_v31 = vld [vmem:[%s3095_s5] sm:$0xff]  ;;  %s3122_s1 = smov 80  }
   0x3   :  { %3128 = sst [smem:[#allocation4_spill]] %s3092_s3  ;;  %v2299_v50 = vld [vmem:[%s3093_s4] ss:$0 sm:$0xff]  ;;  %s2408_s3 = smov 96  }
   0x4   :  { %s3129_s29 = sld [smem:[#allocation2_spill]]  ;;  %168 = vmatpush.msra.mxu0 %v143_v29  ;;  %v2302_v60 = vld [vmem:[%s3094_s6] ss:$0 sm:$0xff]  ;;  %s3120_s0 = smov 112  }
   0x5   :  { %s3130_s20 = sld [smem:[#allocation3_spill]]  ;;  %v2602_v11 = vld [vmem:[%s3096_s2] ss:$0 sm:$0xff]  ;;  %s3114_s21 = smov 104  }
   0x6   :  { %169 = vmatpush.msra.mxu0 %v142_v30  ;;  %s3131_s19 = sld [smem:[#allocation4_spill]]  ;;  %s3116_s22 = smov 48  }
   0x7   :  { %v2319_v12 = vpop.eup %2318  ;;  %s3112_s25 = smov 40   ;;  %s3132_s27 = smov 64  }
   0x8   :  { %v87_v13 = vmul.f32 32.0, %v2319_v12  ;;  %vm91_vm1 = vweird.f32 %v2319_v12  ;;  %170 = vmatpush.msra.mxu0 %v141_v31 }
   0xa   :  { %v61_v1 = vld [vmem:[%s3129_s29] sm:$0xff]  ;;  %v62_v2 = vld [vmem:[%s3129_s29 + $0x8] sm:$0xff]  ;;  %v88_v14 = vsub.f32 1.0, %v87_v13  ;;  %s3124_s29 = smov 64  }
   0xb   :  { %65 = vperm.xlu0 %2297, %v61_v1   ;;  %v59_v3 = vld [vmem:[%s3130_s20] sm:$0xff]  ;;  %v60_v7 = vld [vmem:[%s3130_s20 + $0x8] sm:$0xff]  ;;  %s3118_s20 = smov 72  }
   0xc   :  { %v89_v15 = vmul.f32 %v2319_v12, %v88_v14  ;;  %v2298_v46 = vld [vmem:[%s3131_s19] ss:$0 sm:$0xff] }
   0xe   :  { %v90_v16 = vadd.f32 %v2319_v12, %v89_v15 }
  0x10   :  { %v2534_v17 = vsel %vm91_vm1, %v2319_v12, %v90_v16 }
  0x13   :  { %70 = vperm.xlu0 %2297, %v62_v2  }
  0x7d   :  { %v66_v4 = vpop.permute.xlu0 %65 }
  0x7e   :  { %v2523_v5 = vmul.f32 %v66_v4, %v59_v3 }
  0x80   :  { %v80_v6 = vsel %vm79_vm0, %v2523_v5, 0.0 }
  0x81   :  { %81 = vadd.xlane.f32.xlu1 %v80_v6 }
  0x85   :  { %v71_v8 = vpop.permute.xlu0 %70 }
  0x86   :  { %v2530_v9 = vmul.f32 %v71_v8, %v60_v7 }
  0x88   :  { %v83_v10 = vsel %vm79_vm0, %v2530_v9, 0.0 }
  0x89   :  { %84 = vadd.xlane.f32.xlu1 %v83_v10 }
  0xf4   :  { %v82_v18 = vpop.xlane.xlu1 %81 }
  0xf5   :  { %v93_v19 = vmul.f32 %v2534_v17, %v82_v18 }
  0xf7   :  { %v95_v20 = vsub.f32 %v2523_v5, %v93_v19  ;;  %v2611_v19 = vld [vmem:[%s3096_s2 + $0x1] ss:$0 sm:$0xff] }
  0xf9   :  { %v97_v21 = vmul.f32 %v95_v20, %v95_v20 }
  0xfb   :  { %v99_v22 = vsel %vm79_vm0, %v97_v21, 0.0 }
  0xfc   :  { %100 = vadd.xlane.f32.xlu2 %v99_v22  ;;  %v85_v23 = vpop.xlane.xlu1 %84 }
  0xfd   :  { %v94_v24 = vmul.f32 %v2534_v17, %v85_v23 }
  0xff   :  { %v96_v25 = vsub.f32 %v2530_v9, %v94_v24 }
 0x101   :  { %v98_v26 = vmul.f32 %v96_v25, %v96_v25 }
 0x103   :  { %v102_v27 = vsel %vm79_vm0, %v98_v26, 0.0 }
 0x104   :  { %103 = vadd.xlane.f32.xlu2 %v102_v27 }
 0x16f   :  { %v101_v32 = vpop.xlane.xlu2 %100 }
 0x170   :  { %v105_v33 = vmul.f32 %v101_v32, %v2534_v17 }
 0x172   :  { %v107_v34 = vadd.f32 1e-05, %v105_v33 }
 0x174   :  { %2320 = vrsqrt.f32 %v107_v34  ;;  %vm115_vm3 = vweird.f32 %v107_v34 }
 0x177   :  { %v104_v35 = vpop.xlane.xlu2 %103 }
 0x178   :  { %v106_v36 = vmul.f32 %v104_v35, %v2534_v17 }
 0x17a   :  { %v2321_v37 = vpop.eup %2320  ;;  %v108_v38 = vadd.f32 1e-05, %v106_v36 }
 0x17b   :  { %v110_v39 = vmul.f32 %v2321_v37, %v107_v34  ;;  %vm116_vm2 = vweird.f32 %v2321_v37 }
 0x17c   :  { %2322 = vrsqrt.f32 %v108_v38  ;;  %vm117_vm4 = vmor %vm115_vm3, %vm116_vm2  ;;  %vm125_vm6 = vweird.f32 %v108_v38 }
 0x17d   :  { %v111_v40 = vmul.f32 %v2321_v37, %v110_v39 }
 0x17f   :  { %v112_v41 = vmul.f32 0.5, %v111_v40 }
 0x181   :  { %v113_v42 = vsub.f32 1.5, %v112_v41 }
 0x182   :  { %v2323_v43 = vpop.eup %2322 }
 0x183   :  { %v114_v44 = vmul.f32 %v2321_v37, %v113_v42  ;;  %v120_v45 = vmul.f32 %v2323_v43, %v108_v38  ;;  %vm126_vm5 = vweird.f32 %v2323_v43 }
 0x184   :  { %vm127_vm7 = vmor %vm125_vm6, %vm126_vm5 }
 0x185   :  { %v118_v47 = vsel %vm117_vm4, %v2321_v37, %v114_v44  ;;  %v121_v48 = vmul.f32 %v2323_v43, %v120_v45 }
 0x186   :  { %v129_v49 = vmul.f32 %v118_v47, %v95_v20 }
 0x187   :  { %v122_v51 = vmul.f32 0.5, %v121_v48 }
 0x188   :  { %v134_v52 = vmul.f32 %v2298_v46, %v129_v49 }
 0x189   :  { %v123_v53 = vsub.f32 1.5, %v122_v51 }
 0x18a   :  { %v139_v54 = vadd.f32 %v2299_v50, %v134_v52 }
 0x18b   :  { %v124_v55 = vmul.f32 %v2323_v43, %v123_v53 }
 0x18c   :  { %2178 = vmatmul.msk.f32.vlgmr.msra.gmra.mxu0 %vm79_vm0, %v139_v54 }
 0x18d   :  { %v128_v56 = vsel %vm127_vm7, %v2323_v43, %v124_v55 }
 0x18e   :  { %v130_v57 = vmul.f32 %v128_v56, %v96_v25 }
 0x190   :  { %v135_v58 = vmul.f32 %v2298_v46, %v130_v57 }
 0x192   :  { %v140_v59 = vadd.f32 %v2299_v50, %v135_v58 }
 0x194   :  { %2179 = vmatmul.msk.f32.gmra.mxu0 %vm79_vm0, %v140_v59 }
 0x209   :  { %v172_v61 = vpop.f32.mrf.mxu0 }
 0x20a   :  { %v2567_v62 = vadd.f32 %v2302_v60, %v172_v61 }
 0x20c   :  { %191 = vrot.lane.b32.xlu0 %v2567_v62, %s2408_s3  ;;  %349 = vrot.lane.b32.xlu2 %v2567_v62, %s2409_s23  ;;  %v2576_v1 = vmul.f32 0.35355338, %v2567_v62 }
 0x211   :  { %v175_v63 = vpop.f32.mrf.mxu0 }
 0x212   :  { %v2573_v0 = vadd.f32 %v2302_v60, %v175_v63 }
 0x214   :  { %347 = vrot.lane.b32.xlu0 %v2576_v1, %s2410_s24  ;;  %220 = vrot.lane.b32.xlu1 %v2573_v0, %s2408_s3  ;;  %v2585_v2 = vmul.f32 0.35355338, %v2573_v0 }
 0x21c   :  { %377 = vrot.lane.b32.xlu0 %v2573_v0, %s2409_s23 }
 0x224   :  { %375 = vrot.lane.b32.xlu0 %v2585_v2, %s2410_s24 }
 0x266   :  { %v350_v4 = vpop.permute.xlu2 %349 }
 0x27e   :  { %v192_v3 = vpop.permute.xlu0 %191 }
 0x27f   :  { %2180 = vmatpush.xpose.msk.msra.mxu1 %vm193_vm8, %v192_v3 }
 0x282   :  { %2181 = vmatmul.msk.f32.vlgmr.msra.gmra.mxu1 %vm193_vm8, %v2576_v1 }
 0x283   :  { %2186 = vmatpush.xpose.msk.msrb.mxu1 %vm193_vm8, %v350_v4 }
 0x286   :  { %v348_v6 = vpop.permute.xlu0 %347  ;;  %v221_v7 = vpop.permute.xlu1 %220 }
 0x287   :  { %2182 = vmatpush.xpose.msk.msra.mxu2 %vm193_vm8, %v221_v7 }
 0x28a   :  { %2183 = vmatmul.msk.f32.vlgmr.msra.gmra.mxu2 %vm193_vm8, %v2585_v2  ;;  %2187 = vmatmul.msk.f32.vlgmr.msrb.gmra.mxu1 %vm193_vm8, %v348_v6 }
 0x28e   :  { %v378_v8 = vpop.permute.xlu0 %377 }
 0x28f   :  { %2188 = vmatpush.xpose.msk.msrb.mxu2 %vm193_vm8, %v378_v8 }
 0x296   :  { %v376_v10 = vpop.permute.xlu0 %375 }
 0x297   :  { %2189 = vmatmul.msk.f32.vlgmr.msrb.gmra.mxu2 %vm193_vm8, %v376_v10 }
 0x2ff   :  { %v216_v12 = vpop.f32.mrf.mxu1 }
 0x300   :  { %v217_v13 = vadd.f32 %v2602_v11, %v216_v12 }
 0x302   :  { %v247_v14 = vsel %vm193_vm8, %v217_v13, -inf }
 0x303   :  { %248 = vmax.xlane.f32.xlu2 %v247_v14  ;;  %v178_v14 = vld [vmem:[%s3097_s7] sm:$0xff] }
 0x304   :  { %553 = vmatpush.msrb.mxu0 %v178_v14 }
 0x307   :  { %v372_v15 = vpop.f32.mrf.mxu1 }
 0x308   :  { %v373_v16 = vadd.f32 %v2602_v11, %v372_v15 }
 0x30a   :  { %v403_v18 = vsel %vm193_vm8, %v373_v16, -inf }
 0x30b   :  { %404 = vmax.xlane.f32.xlu0 %v403_v18 }
 0x30d   :  { %v244_v20 = vpop.f32.mrf.mxu2 }
 0x30e   :  { %v245_v21 = vadd.f32 %v2611_v19, %v244_v20 }
 0x310   :  { %v250_v22 = vsel %vm193_vm8, %v245_v21, -inf }
 0x311   :  { %251 = vmax.xlane.f32.xlu1 %v250_v22 }
 0x31a   :  { %v400_v38 = vpop.f32.mrf.mxu2 }
 0x31b   :  { %v2641_v39 = vadd.f32 %v2611_v19, %v400_v38  ;;  %v179_v38 = vld [vmem:[%s3097_s7 + $0x8] sm:$0xff] }
 0x31c   :  { %524 = vmatpush.msra.mxu2 %v179_v38 }
 0x31d   :  { %v406_v40 = vsel %vm193_vm8, %v2641_v39, -inf }
 0x32a   :  { %321 = vrot.lane.b32.xlu1 %v2573_v0, %s3124_s29 }
 0x376   :  { %v249_v23 = vpop.xlane.xlu2 %248 }
 0x377   :  { %v253_v24 = vsub.f32 %v217_v13, %v249_v23 }
 0x379   :  { %v255_v25 = vmul.f32 1.442695, %v253_v24 }
 0x37b   :  { %2324 = vpow2.f32 %v255_v25 }
 0x37e   :  { %v405_v26 = vpop.xlane.xlu0 %404 }
 0x37f   :  { %v409_v27 = vsub.f32 %v373_v16, %v405_v26 }
 0x381   :  { %v2325_v28 = vpop.eup %2324  ;;  %v411_v29 = vmul.f32 1.442695, %v409_v27 }
 0x382   :  { %v259_v30 = vsel %vm193_vm8, %v2325_v28, 0.0 }
 0x383   :  { %2326 = vpow2.f32 %v411_v29  ;;  %260 = vadd.xlane.f32.xlu2 %v259_v30 }
 0x384   :  { %v252_v31 = vpop.xlane.xlu1 %251 }
 0x385   :  { %v254_v32 = vsub.f32 %v245_v21, %v252_v31 }
 0x387   :  { %v257_v33 = vmul.f32 1.442695, %v254_v32 }
 0x389   :  { %v2618_v34 = vpop.eup %2326  ;;  %2328 = vpow2.f32 %v257_v33 }
 0x38a   :  { %v415_v35 = vsel %vm193_vm8, %v2618_v34, 0.0 }
 0x38b   :  { %416 = vadd.xlane.f32.xlu0 %v415_v35 }
 0x38f   :  { %v2622_v36 = vpop.eup %2328 }
 0x390   :  { %v262_v37 = vsel %vm193_vm8, %v2622_v36, 0.0 }
 0x391   :  { %263 = vadd.xlane.f32.xlu1 %v262_v37 }
 0x39b   :  { %295 = vrot.lane.b32.xlu2 %v2567_v62, %s3124_s29 }
 0x39c   :  { %v322_v42 = vpop.permute.xlu1 %321 }
 0x39f   :  { %451 = vrot.lane.b32.xlu0 %v2567_v62, %s2412_s30 }
 0x3a3   :  { %563 = vrot.lane.b32.xlu2 %v2567_v62, %s3122_s1 }
 0x3aa   :  { %561 = vrot.lane.b32.xlu1 %v2576_v1, %s3120_s0 }
 0x3b2   :  { %477 = vrot.lane.b32.xlu1 %v2573_v0, %s2412_s30 }
 0x3ba   :  { %591 = vrot.lane.b32.xlu1 %v2573_v0, %s3122_s1  ;;  %s3135_s1 = smov 72  }
 0x3c2   :  { %589 = vrot.lane.b32.xlu1 %v2585_v2, %s3120_s0  ;;  %s3137_s0 = smov 104  }
 0x3c9   :  { %407 = vmax.xlane.f32.xlu0 %v406_v40 }
 0x3ca   :  { %750 = vrot.lane.b32.xlu1 %v2567_v62, %s3118_s20 }
 0x3d2   :  { %748 = vrot.lane.b32.xlu1 %v2576_v1, %s3114_s21 }
 0x3da   :  { %665 = vrot.lane.b32.xlu1 %v2567_v62, %s3116_s22 }
 0x3f6   :  { %v261_v41 = vpop.xlane.xlu2 %260 }
 0x3f7   :  { %2330 = vrcp.f32 %v261_v41  ;;  %v276_v48 = vand.u32 2147483648, %v261_v41  ;;  %v274_v50 = vand.u32 2147483647, %v261_v41  ;;  %vm270_vm10 = vweird.f32 %v261_v41 }
 0x3f9   :  { %v277_v54 = vor.u32 1.1754944e-38, %v276_v48  ;;  %vm275_vm12 = vcmp.eq.f32.partialorder %v274_v50, 8.507059e+37 }
 0x3fd   :  { %v2331_v43 = vpop.eup %2330 }
 0x3fe   :  { %v266_v44 = vmul.f32 %v2331_v43, %v261_v41  ;;  %v417_v45 = vpop.xlane.xlu0 %416  ;;  %v296_v46 = vpop.permute.xlu2 %295  ;;  %vm271_vm9 = vweird.f32 %v2331_v43 }
 0x3ff   :  { %2332 = vrcp.f32 %v417_v45  ;;  %316 = vmatpush.msra.mxu3 %v296_v46  ;;  %vm272_vm11 = vmor %vm270_vm10, %vm271_vm9  ;;  %v432_v15 = vand.u32 2147483648, %v417_v45  ;;  %vm426_vm3 = vweird.f32 %v417_v45  ;;  %v430_v18 = vand.u32 2147483647, %v417_v45 }
 0x400   :  { %v267_v47 = vsub.f32 1.0, %v266_v44 }
 0x401   :  { %342 = vmatpush.msrb.mxu3 %v322_v42  ;;  %v433_v23 = vor.u32 1.1754944e-38, %v432_v15  ;;  %vm431_vm5 = vcmp.eq.f32.partialorder %v430_v18, 8.507059e+37 }
 0x402   :  { %v268_v49 = vmul.f32 %v2331_v43, %v267_v47 }
 0x404   :  { %v264_v51 = vpop.xlane.xlu1 %263  ;;  %v269_v52 = vadd.f32 %v2331_v43, %v268_v49 }
 0x405   :  { %v2333_v53 = vpop.eup %2332  ;;  %2334 = vrcp.f32 %v264_v51  ;;  %v291_v1 = vand.u32 2147483648, %v264_v51  ;;  %v289_v6 = vand.u32 2147483647, %v264_v51  ;;  %vm285_vm14 = vweird.f32 %v264_v51 }
 0x406   :  { %v273_v55 = vsel %vm272_vm11, %v2331_v43, %v269_v52  ;;  %v422_v57 = vmul.f32 %v2333_v53, %v417_v45  ;;  %vm427_vm1 = vweird.f32 %v2333_v53  ;;  %v564_v22 = vpop.permute.xlu2 %563 }
 0x407   :  { %v278_v56 = vsel %vm275_vm12, %v277_v54, %v273_v55  ;;  %v292_v10 = vor.u32 1.1754944e-38, %v291_v1  ;;  %vm290_vm2 = vcmp.eq.f32.partialorder %v289_v6, 8.507059e+37  ;;  %vm428_vm4 = vmor %vm426_vm3, %vm427_vm1 }
 0x408   :  { %v279_v58 = vmul.f32 %v2325_v28, %v278_v56  ;;  %v423_v60 = vsub.f32 1.0, %v422_v57 }
 0x40a   :  { %2184 = vmatmul.msk.f32.vlgmr.msra.gmra.mxu3 %vm193_vm8, %v279_v58  ;;  %v424_v3 = vmul.f32 %v2333_v53, %v423_v60 }
 0x40b   :  { %v2335_v59 = vpop.eup %2334 }
 0x40c   :  { %v281_v61 = vmul.f32 %v2335_v59, %v264_v51  ;;  %vm286_vm13 = vweird.f32 %v2335_v59  ;;  %v425_v12 = vadd.f32 %v2333_v53, %v424_v3 }
 0x40d   :  { %vm287_vm15 = vmor %vm285_vm14, %vm286_vm13 }
 0x40e   :  { %v282_v63 = vsub.f32 1.0, %v281_v61  ;;  %v429_v21 = vsel %vm428_vm4, %v2333_v53, %v425_v12 }
 0x40f   :  { %v434_v24 = vsel %vm431_vm5, %v433_v23, %v429_v21 }
 0x410   :  { %v283_v4 = vmul.f32 %v2335_v59, %v282_v63  ;;  %v435_v26 = vmul.f32 %v2618_v34, %v434_v24 }
 0x411   :  { %v452_v7 = vpop.permute.xlu0 %451 }
 0x412   :  { %v284_v8 = vadd.f32 %v2335_v59, %v283_v4  ;;  %472 = vmatpush.msra.mxu3 %v452_v7 }
 0x414   :  { %v288_v13 = vsel %vm287_vm15, %v2335_v59, %v284_v8 }
 0x415   :  { %v293_v16 = vsel %vm290_vm2, %v292_v10, %v288_v13 }
 0x416   :  { %v294_v20 = vmul.f32 %v2622_v36, %v293_v16 }
 0x418   :  { %2185 = vmatmul.msk.f32.vlgmr.msrb.gmra.mxu3 %vm193_vm8, %v294_v20 }
 0x419   :  { %2196 = vmatpush.xpose.msk.msrb.mxu3 %vm193_vm8, %v564_v22 }
 0x41c   :  { %v562_v25 = vpop.permute.xlu1 %561 }
 0x420   :  { %2190 = vmatmul.msk.f32.vlgmr.msra.gmra.mxu3 %vm193_vm8, %v435_v26 }
 0x424   :  { %v478_v27 = vpop.permute.xlu1 %477 }
 0x425   :  { %498 = vmatpush.msra.mxu1 %v478_v27 }
 0x428   :  { %2197 = vmatmul.msk.f32.vlgmr.msrb.gmra.mxu3 %vm193_vm8, %v562_v25 }
 0x42c   :  { %v592_v28 = vpop.permute.xlu1 %591 }
 0x42d   :  { %2198 = vmatpush.xpose.msk.msrb.mxu1 %vm193_vm8, %v592_v28 }
 0x434   :  { %v590_v29 = vpop.permute.xlu1 %589 }
 0x43c   :  { %v751_v30 = vpop.permute.xlu1 %750  ;;  %v408_v31 = vpop.xlane.xlu0 %407 }
 0x43d   :  { %v410_v32 = vsub.f32 %v2641_v39, %v408_v31  ;;  %2204 = vmatpush.xpose.msk.msra.mxu0 %vm193_vm8, %v751_v30 }
 0x43f   :  { %v413_v33 = vmul.f32 1.442695, %v410_v32 }
 0x441   :  { %2336 = vpow2.f32 %v413_v33 }
 0x444   :  { %v749_v35 = vpop.permute.xlu1 %748 }
 0x447   :  { %v2337_v34 = vpop.eup %2336 }
 0x448   :  { %v418_v36 = vsel %vm193_vm8, %v2337_v34, 0.0 }
 0x449   :  { %419 = vadd.xlane.f32.xlu2 %v418_v36  ;;  %v180_v36 = vld [vmem:[%s3097_s7 + $0x10] sm:$0xff] }
 0x44a   :  { %738 = vmatpush.msrb.mxu2 %v180_v36 }
 0x44c   :  { %v666_v37 = vpop.permute.xlu1 %665 }
 0x44d   :  { %686 = vmatpush.msra.mxu3 %v666_v37 }
 0x48d   :  { %v318_v40 = vpop.f32.mrf.mxu3 }
 0x48e   :  { %2194 = vmatmul.msk.f32.vlgmr.msrb.gmra.mxu0 %vm193_vm8, %v318_v40 }
 0x49b   :  { %v344_v39 = vpop.f32.mrf.mxu3 }
 0x49c   :  { %2195 = vmatmul.msk.f32.gmra.mxu0 %vm193_vm8, %v344_v39 }
 0x4a3   :  { %v474_v41 = vpop.f32.mrf.mxu3 }
 0x4a4   :  { %2192 = vmatmul.msk.f32.vlgmr.msra.gmra.mxu2 %vm193_vm8, %v474_v41  ;;  %2205 = vmatmul.msk.f32.vlgmr.msra.gmra.mxu0 %vm193_vm8, %v749_v35 }
 0x4ab   :  { %v586_v42 = vpop.f32.mrf.mxu3 }
 0x4ac   :  { %v587_v43 = vadd.f32 %v2602_v11, %v586_v42 }
 0x4ae   :  { %v617_v44 = vsel %vm193_vm8, %v587_v43, -inf }
 0x4af   :  { %618 = vmax.xlane.f32.xlu0 %v617_v44 }
 0x4bc   :  { %v420_v45 = vpop.xlane.xlu2 %419 }
 0x4bd   :  { %2338 = vrcp.f32 %v420_v45  ;;  %v447_v49 = vand.u32 2147483648, %v420_v45  ;;  %v445_v51 = vand.u32 2147483647, %v420_v45  ;;  %vm441_vm7 = vweird.f32 %v420_v45 }
 0x4bf   :  { %v448_v53 = vor.u32 1.1754944e-38, %v447_v49  ;;  %vm446_vm10 = vcmp.eq.f32.partialorder %v445_v51, 8.507059e+37 }
 0x4c3   :  { %v2339_v46 = vpop.eup %2338  ;;  %778 = vrot.lane.b32.xlu0 %v2573_v0, %s3118_s20 }
 0x4c4   :  { %v437_v47 = vmul.f32 %v2339_v46, %v420_v45  ;;  %vm442_vm6 = vweird.f32 %v2339_v46 }
 0x4c5   :  { %vm443_vm9 = vmor %vm441_vm7, %vm442_vm6 }
 0x4c6   :  { %v438_v48 = vsub.f32 1.0, %v437_v47 }
 0x4c8   :  { %v439_v50 = vmul.f32 %v2339_v46, %v438_v48 }
 0x4ca   :  { %v440_v52 = vadd.f32 %v2339_v46, %v439_v50 }
 0x4cc   :  { %v444_v54 = vsel %vm443_vm9, %v2339_v46, %v440_v52 }
 0x4cd   :  { %v449_v55 = vsel %vm446_vm10, %v448_v53, %v444_v54 }
 0x4ce   :  { %v450_v56 = vmul.f32 %v2337_v34, %v449_v55 }
 0x4d0   :  { %2191 = vmatmul.msk.f32.vlgmr.msra.gmra.mxu1 %vm193_vm8, %v450_v56 }
 0x4d8   :  { %2199 = vmatmul.msk.f32.vlgmr.msrb.gmra.mxu1 %vm193_vm8, %v590_v29 }
 0x50b   :  { %v2678_v57 = vpop.f32.mrf.mxu0 }
 0x519   :  { %v2680_v58 = vpop.f32.mrf.mxu0 }
 0x521   :  { %v773_v59 = vpop.f32.mrf.mxu0 }
 0x522   :  { %v774_v60 = vadd.f32 %v2602_v11, %v773_v59  ;;  %v619_v61 = vpop.xlane.xlu0 %618 }
 0x523   :  { %v623_v63 = vsub.f32 %v587_v43, %v619_v61 }
 0x524   :  { %v804_v1 = vsel %vm193_vm8, %v774_v60, -inf }
 0x525   :  { %v625_v3 = vmul.f32 1.442695, %v623_v63  ;;  %805 = vmax.xlane.f32.xlu0 %v804_v1 }
 0x527   :  { %2340 = vpow2.f32 %v625_v3 }
 0x52d   :  { %v2341_v4 = vpop.eup %2340 }
 0x52e   :  { %v629_v6 = vsel %vm193_vm8, %v2341_v4, 0.0 }
 0x52f   :  { %630 = vadd.xlane.f32.xlu2 %v629_v6 }
 0x535   :  { %v779_v7 = vpop.permute.xlu0 %778 }
 0x536   :  { %2206 = vmatpush.xpose.msk.msrb.mxu3 %vm193_vm8, %v779_v7 }
 0x539   :  { %852 = vrot.lane.b32.xlu0 %v2567_v62, %s3112_s25 }
 0x547   :  { %776 = vrot.lane.b32.xlu2 %v2585_v2, %s3114_s21 }
 0x54d   :  { %v500_v11 = vpop.f32.mrf.mxu1 }
 0x54e   :  { %2193 = vmatmul.msk.f32.gmra.mxu2 %vm193_vm8, %v500_v11 }
 0x555   :  { %v614_v8 = vpop.f32.mrf.mxu1 }
 0x556   :  { %v615_v10 = vadd.f32 %v2611_v19, %v614_v8 }
 0x558   :  { %v620_v12 = vsel %vm193_vm8, %v615_v10, -inf }
 0x559   :  { %621 = vmax.xlane.f32.xlu1 %v620_v12 }
 0x598   :  { %v806_v13 = vpop.xlane.xlu0 %805 }
 0x599   :  { %v810_v14 = vsub.f32 %v774_v60, %v806_v13 }
 0x59b   :  { %v812_v15 = vmul.f32 1.442695, %v810_v14  ;;  %v181_v14 = vld [vmem:[%s3097_s7 + $0x18] sm:$0xff] }
 0x59d   :  { %2342 = vpow2.f32 %v812_v15 }
 0x5a2   :  { %v631_v16 = vpop.xlane.xlu2 %630 }
 0x5a3   :  { %v2693_v18 = vpop.eup %2342  ;;  %2344 = vrcp.f32 %v631_v16  ;;  %v646_v22 = vand.u32 2147483648, %v631_v16  ;;  %v644_v24 = vand.u32 2147483647, %v631_v16  ;;  %vm640_vm12 = vweird.f32 %v631_v16 }
 0x5a4   :  { %v816_v62 = vsel %vm193_vm8, %v2693_v18, 0.0 }
 0x5a5   :  { %817 = vadd.xlane.f32.xlu1 %v816_v62  ;;  %v647_v26 = vor.u32 1.1754944e-38, %v646_v22  ;;  %vm645_vm14 = vcmp.eq.f32.partialorder %v644_v24, 8.507059e+37 }
 0x5a9   :  { %v2345_v2 = vpop.eup %2344 }
 0x5aa   :  { %v636_v20 = vmul.f32 %v2345_v2, %v631_v16  ;;  %vm641_vm11 = vweird.f32 %v2345_v2  ;;  %v777_v30 = vpop.permute.xlu2 %776 }
 0x5ab   :  { %vm642_vm13 = vmor %vm640_vm12, %vm641_vm11  ;;  %v853_v40 = vpop.permute.xlu0 %852 }
 0x5ac   :  { %v637_v21 = vsub.f32 1.0, %v636_v20 }
 0x5ae   :  { %v638_v23 = vmul.f32 %v2345_v2, %v637_v21 }
 0x5b0   :  { %v639_v25 = vadd.f32 %v2345_v2, %v638_v23 }
 0x5b2   :  { %v643_v27 = vsel %vm642_vm13, %v2345_v2, %v639_v25 }
 0x5b3   :  { %v648_v28 = vsel %vm645_vm14, %v647_v26, %v643_v27 }
 0x5b4   :  { %v649_v29 = vmul.f32 %v2341_v4, %v648_v28 }
 0x5b6   :  { %2200 = vmatmul.msk.f32.vlgmr.msra.gmra.mxu3 %vm193_vm8, %v649_v29  ;;  %v526_v29 = vpop.f32.mrf.mxu2 }
 0x5b7   :  { %925 = vmatpush.msra.mxu3 %v181_v14  ;;  %v1041_v14 = vld [vmem:[%s3103_s13 + $0x18] sm:$0xff] }
 0x5be   :  { %691 = vrot.lane.b32.xlu1 %v2573_v0, %s3116_s22  ;;  %2207 = vmatmul.msk.f32.vlgmr.msrb.gmra.mxu3 %vm193_vm8, %v777_v30 }
 0x5c6   :  { %878 = vrot.lane.b32.xlu1 %v2573_v0, %s3112_s25  ;;  %s3138_s25 = smov 40  }
 0x5cc   :  { %v622_v31 = vpop.xlane.xlu1 %621 }
 0x5cd   :  { %v624_v32 = vsub.f32 %v615_v10, %v622_v31 }
 0x5cf   :  { %v627_v33 = vmul.f32 1.442695, %v624_v32  ;;  %v556_v32 = vadd.f32 %v2678_v57, %v526_v29 }
 0x5d1   :  { %2346 = vpow2.f32 %v627_v33  ;;  %v529_v30 = vpop.f32.mrf.mxu2 }
 0x5d7   :  { %v2347_v35 = vpop.eup %2346 }
 0x5d8   :  { %v632_v34 = vsel %vm193_vm8, %v2347_v35, 0.0 }
 0x5d9   :  { %633 = vadd.xlane.f32.xlu2 %v632_v34 }
 0x618   :  { %v818_v37 = vpop.xlane.xlu1 %817 }
 0x619   :  { %2348 = vrcp.f32 %v818_v37  ;;  %v833_v60 = vand.u32 2147483648, %v818_v37  ;;  %vm827_vm5 = vweird.f32 %v818_v37  ;;  %v831_v63 = vand.u32 2147483647, %v818_v37 }
 0x61b   :  { %v834_v4 = vor.u32 1.1754944e-38, %v833_v60  ;;  %vm832_vm7 = vcmp.eq.f32.partialorder %v831_v63, 8.507059e+37 }
 0x61f   :  { %v2349_v45 = vpop.eup %2348 }
 0x620   :  { %v823_v46 = vmul.f32 %v2349_v45, %v818_v37  ;;  %vm828_vm3 = vweird.f32 %v2349_v45 }
 0x621   :  { %vm829_vm6 = vmor %vm827_vm5, %vm828_vm3 }
 0x622   :  { %v824_v48 = vsub.f32 1.0, %v823_v46 }
 0x624   :  { %v825_v52 = vmul.f32 %v2349_v45, %v824_v48 }
 0x626   :  { %v826_v56 = vadd.f32 %v2349_v45, %v825_v52  ;;  %v1000_v52 = vld [vmem:[%s3102_s11 + $0x8] sm:$0xff] }
 0x628   :  { %v830_v3 = vsel %vm829_vm6, %v2349_v45, %v826_v56 }
 0x629   :  { %v835_v6 = vsel %vm832_vm7, %v834_v4, %v830_v3 }
 0x62a   :  { %v836_v7 = vmul.f32 %v2693_v18, %v835_v6  ;;  %v2307_v6 = vld [vmem:[%s3100_s10] ss:$0 sm:$0xff] }
 0x630   :  { %v692_v38 = vpop.permute.xlu1 %691 }
 0x631   :  { %712 = vmatpush.msra.mxu1 %v692_v38 }
 0x633   :  { %873 = vmatpush.msrb.mxu1 %v853_v40 }
 0x638   :  { %v879_v39 = vpop.permute.xlu1 %878 }
 0x639   :  { %v688_v0 = vpop.f32.mrf.mxu3  ;;  %899 = vmatpush.msrb.mxu0 %v879_v39 }
 0x63a   :  { %2202 = vmatmul.msk.f32.vlgmr.msrb.gmra.mxu2 %vm193_vm8, %v688_v0 }
 0x641   :  { %v801_v41 = vpop.f32.mrf.mxu3 }
 0x642   :  { %v802_v42 = vadd.f32 %v2611_v19, %v801_v41 }
 0x644   :  { %v807_v43 = vsel %vm193_vm8, %v802_v42, -inf }
 0x645   :  { %808 = vmax.xlane.f32.xlu2 %v807_v43 }
 0x64c   :  { %v634_v44 = vpop.xlane.xlu2 %633 }
 0x64d   :  { %2350 = vrcp.f32 %v634_v44  ;;  %v661_v51 = vand.u32 2147483648, %v634_v44  ;;  %v659_v54 = vand.u32 2147483647, %v634_v44  ;;  %vm655_vm1 = vweird.f32 %v634_v44 }
 0x64f   :  { %v662_v19 = vor.u32 1.1754944e-38, %v661_v51  ;;  %vm660_vm4 = vcmp.eq.f32.partialorder %v659_v54, 8.507059e+37  ;;  %v1002_v51 = vld [vmem:[%s3102_s11 + $0x18] sm:$0xff] }
 0x653   :  { %v2351_v47 = vpop.eup %2350 }
 0x654   :  { %v651_v49 = vmul.f32 %v2351_v47, %v634_v44  ;;  %vm656_vm15 = vweird.f32 %v2351_v47 }
 0x655   :  { %vm657_vm2 = vmor %vm655_vm1, %vm656_vm15  ;;  %vm1050_vm1 = vcmask 523264  }
 0x656   :  { %v652_v50 = vsub.f32 1.0, %v651_v49 }
 0x658   :  { %v653_v53 = vmul.f32 %v2351_v47, %v652_v50 }
 0x65a   :  { %v654_v55 = vadd.f32 %v2351_v47, %v653_v53 }
 0x65c   :  { %v658_v59 = vsel %vm657_vm2, %v2351_v47, %v654_v55 }
 0x65d   :  { %v663_v61 = vsel %vm660_vm4, %v662_v19, %v658_v59 }
 0x65e   :  { %v664_v1 = vmul.f32 %v2347_v35, %v663_v61  ;;  %v2305_v35 = vld [vmem:[%s3098_s8] ss:$0 sm:$0xff] }
 0x660   :  { %2201 = vmatmul.msk.f32.vlgmr.msra.gmra.mxu1 %vm193_vm8, %v664_v1  ;;  %v2306_v1 = vld [vmem:[%s3099_s9] ss:$0 sm:$0xff] }
 0x661   :  { %1025 = vmatpush.msra.mxu1 %v1002_v51 }
 0x668   :  { %2208 = vmatmul.msk.f32.vlgmr.msrb.gmra.mxu1 %vm193_vm8, %v836_v7 }
 0x6b8   :  { %v809_v11 = vpop.xlane.xlu2 %808 }
 0x6b9   :  { %v811_v8 = vsub.f32 %v802_v42, %v809_v11 }
 0x6bb   :  { %v814_v10 = vmul.f32 1.442695, %v811_v8  ;;  %v1045_v8 = vld [vmem:[%s3103_s13 + $0x38] sm:$0xff] }
 0x6bc   :  { %1065 = vmatpush.msra.mxu2 %v1045_v8 }
 0x6bd   :  { %2352 = vpow2.f32 %v814_v10  ;;  %v740_v31 = vpop.f32.mrf.mxu2  ;;  %v1044_v10 = vld [vmem:[%s3103_s13 + $0x30] sm:$0xff] }
 0x6be   :  { %v746_v33 = vadd.f32 %v740_v31, %v556_v32  ;;  %1066 = vmatpush.msra.mxu2 %v1044_v10 }
 0x6c3   :  { %v2353_v12 = vpop.eup %2352 }
 0x6c4   :  { %v819_v13 = vsel %vm193_vm8, %v2353_v12, 0.0 }
 0x6c5   :  { %820 = vadd.xlane.f32.xlu2 %v819_v13  ;;  %v1042_v13 = vld [vmem:[%s3103_s13 + $0x20] sm:$0xff] }
 0x6dd   :  { %v714_v15 = vpop.f32.mrf.mxu1 }
 0x6de   :  { %2203 = vmatmul.msk.f32.gmra.mxu2 %vm193_vm8, %v714_v15 }
 0x6e5   :  { %v875_v16 = vpop.f32.mrf.mxu1 }
 0x6e6   :  { %2210 = vmatmul.msk.f32.vlgmr.msra.gmra.mxu3 %vm193_vm8, %v875_v16 }
 0x738   :  { %v821_v18 = vpop.xlane.xlu2 %820 }
 0x739   :  { %2354 = vrcp.f32 %v821_v18  ;;  %v848_v21 = vand.u32 2147483648, %v821_v18  ;;  %v846_v23 = vand.u32 2147483647, %v821_v18  ;;  %vm842_vm10 = vweird.f32 %v821_v18 }
 0x73b   :  { %v849_v25 = vor.u32 1.1754944e-38, %v848_v21  ;;  %vm847_vm12 = vcmp.eq.f32.partialorder %v846_v23, 8.507059e+37  ;;  %v1039_v21 = vld [vmem:[%s3103_s13 + $0x8] sm:$0xff]  ;;  %v2308_v23 = vld [vmem:[%s3101_s12] ss:$0 sm:$0xff] }
 0x73f   :  { %v2355_v62 = vpop.eup %2354 }
 0x740   :  { %v838_v2 = vmul.f32 %v2355_v62, %v821_v18  ;;  %vm843_vm9 = vweird.f32 %v2355_v62 }
 0x741   :  { %vm844_vm11 = vmor %vm842_vm10, %vm843_vm9 }
 0x742   :  { %v839_v20 = vsub.f32 1.0, %v838_v2 }
 0x744   :  { %v840_v22 = vmul.f32 %v2355_v62, %v839_v20  ;;  %v1040_v20 = vld [vmem:[%s3103_s13 + $0x10] sm:$0xff] }
 0x746   :  { %v841_v24 = vadd.f32 %v2355_v62, %v840_v22  ;;  %v1038_v22 = vld [vmem:[%s3103_s13] sm:$0xff] }
 0x748   :  { %v845_v26 = vsel %vm844_vm11, %v2355_v62, %v841_v24 }
 0x749   :  { %v850_v27 = vsel %vm847_vm12, %v849_v25, %v845_v26 }
 0x74a   :  { %v851_v28 = vmul.f32 %v2353_v12, %v850_v27  ;;  %v1043_v12 = vld [vmem:[%s3103_s13 + $0x28] sm:$0xff] }
 0x74b   :  { %1067 = vmatpush.msra.mxu2 %v1043_v12 }
 0x74c   :  { %2209 = vmatmul.msk.f32.vlgmr.msrb.gmra.mxu0 %vm193_vm8, %v851_v28 }
 0x74d   :  { %1068 = vmatpush.msra.mxu2 %v1042_v13 }
 0x74f   :  { %1069 = vmatpush.msra.mxu2 %v1041_v14 }
 0x751   :  { %1070 = vmatpush.msra.mxu2 %v1040_v20 }
 0x753   :  { %1071 = vmatpush.msra.mxu2 %v1039_v21 }
 0x755   :  { %1072 = vmatpush.msra.mxu2 %v1038_v22 }
 0x761   :  { %v743_v44 = vpop.f32.mrf.mxu2 }
 0x769   :  { %v927_v34 = vpop.f32.mrf.mxu3 }
 0x76a   :  { %v933_v36 = vadd.f32 %v927_v34, %v746_v33 }
 0x76c   :  { %v939_v37 = vadd.f32 %v2305_v35, %v933_v36 }
 0x76e   :  { %v2725_v38 = vadd.f32 %v939_v37, %v2523_v5  ;;  %v559_v5 = vadd.f32 %v2680_v58, %v529_v30  ;;  %v1001_v58 = vld [vmem:[%s3102_s11 + $0x10] sm:$0xff] }
 0x76f   :  { %1026 = vmatpush.msra.mxu1 %v1001_v58 }
 0x770   :  { %v945_v40 = vsel %vm79_vm0, %v2725_v38, 0.0  ;;  %v747_v45 = vadd.f32 %v743_v44, %v559_v5 }
 0x771   :  { %946 = vadd.xlane.f32.xlu0 %v945_v40  ;;  %1027 = vmatpush.msra.mxu1 %v1000_v52 }
 0x7c9   :  { %v901_v39 = vpop.f32.mrf.mxu0 }
 0x7ca   :  { %2211 = vmatmul.msk.f32.gmra.mxu3 %vm193_vm8, %v901_v39 }
 0x7e4   :  { %v947_v0 = vpop.xlane.xlu0 %946 }
 0x7e5   :  { %v951_v57 = vmul.f32 %v947_v0, %v2534_v17  ;;  %v2309_v0 = vld [vmem:[%s3104_s14] ss:$0 sm:$0xff] }
 0x7e7   :  { %v953_v41 = vsub.f32 %v2725_v38, %v951_v57 }
 0x7e9   :  { %v955_v42 = vmul.f32 %v953_v41, %v953_v41 }
 0x7eb   :  { %v957_v43 = vsel %vm79_vm0, %v955_v42, 0.0 }
 0x7ec   :  { %958 = vadd.xlane.f32.xlu2 %v957_v43 }
 0x84d   :  { %v930_v46 = vpop.f32.mrf.mxu3 }
 0x84e   :  { %v934_v47 = vadd.f32 %v930_v46, %v747_v45 }
 0x850   :  { %v940_v48 = vadd.f32 %v2305_v35, %v934_v47 }
 0x852   :  { %v2735_v49 = vadd.f32 %v940_v48, %v2530_v9  ;;  %v999_v9 = vld [vmem:[%s3102_s11] sm:$0xff] }
 0x853   :  { %1028 = vmatpush.msra.mxu1 %v999_v9 }
 0x854   :  { %v948_v50 = vsel %vm79_vm0, %v2735_v49, 0.0 }
 0x855   :  { %949 = vadd.xlane.f32.xlu1 %v948_v50 }
 0x85f   :  { %v959_v53 = vpop.xlane.xlu2 %958 }
 0x860   :  { %v963_v54 = vmul.f32 %v959_v53, %v2534_v17  ;;  %v2221_v53 = vld [vmem:[%s3095_s5 + $0x38] sm:$0xff] }
 0x861   :  { %1168 = vmatpush.msra.mxu0 %v2221_v53 }
 0x862   :  { %v965_v55 = vadd.f32 1e-05, %v963_v54  ;;  %v2220_v54 = vld [vmem:[%s3095_s5 + $0x30] sm:$0xff] }
 0x863   :  { %1169 = vmatpush.msra.mxu0 %v2220_v54 }
 0x864   :  { %2356 = vrsqrt.f32 %v965_v55  ;;  %vm973_vm14 = vweird.f32 %v965_v55 }
 0x86a   :  { %v2357_v19 = vpop.eup %2356 }
 0x86b   :  { %v968_v56 = vmul.f32 %v2357_v19, %v965_v55  ;;  %vm974_vm13 = vweird.f32 %v2357_v19  ;;  %v2219_v55 = vld [vmem:[%s3095_s5 + $0x28] sm:$0xff] }
 0x86c   :  { %vm975_vm15 = vmor %vm973_vm14, %vm974_vm13  ;;  %1170 = vmatpush.msra.mxu0 %v2219_v55 }
 0x86d   :  { %v969_v59 = vmul.f32 %v2357_v19, %v968_v56 }
 0x86f   :  { %v970_v60 = vmul.f32 0.5, %v969_v59 }
 0x871   :  { %v971_v61 = vsub.f32 1.5, %v970_v60 }
 0x873   :  { %v972_v63 = vmul.f32 %v2357_v19, %v971_v61 }
 0x875   :  { %v976_v3 = vsel %vm975_vm15, %v2357_v19, %v972_v63 }
 0x876   :  { %v987_v4 = vmul.f32 %v976_v3, %v953_v41 }
 0x878   :  { %v992_v7 = vmul.f32 %v2306_v1, %v987_v4 }
 0x87a   :  { %v997_v11 = vadd.f32 %v2307_v6, %v992_v7 }
 0x87c   :  { %2212 = vmatmul.msk.f32.vlgmr.msra.gmra.mxu1 %vm79_vm0, %v997_v11  ;;  %v2301_v11 = vld [vmem:[%s3093_s4 + $0x1] ss:$0 sm:$0xff] }
 0x8c8   :  { %v950_v15 = vpop.xlane.xlu1 %949 }
 0x8c9   :  { %v952_v16 = vmul.f32 %v950_v15, %v2534_v17 }
 0x8cb   :  { %v954_v18 = vsub.f32 %v2735_v49, %v952_v16 }
 0x8cd   :  { %v956_v62 = vmul.f32 %v954_v18, %v954_v18 }
 0x8cf   :  { %v960_v2 = vsel %vm79_vm0, %v956_v62, 0.0  ;;  %v2310_v62 = vld [vmem:[%s3094_s6 + $0x1] ss:$0 sm:$0xff] }
 0x8d0   :  { %961 = vadd.xlane.f32.xlu2 %v960_v2 }
 0x8f9   :  { %v1030_v24 = vpop.f32.mrf.mxu1 }
 0x8fa   :  { %v1031_v25 = vadd.f32 %v2308_v23, %v1030_v24 }
 0x8fc   :  { %v1036_v26 = vmax.f32 %v1031_v25, 0.0 }
 0x8fe   :  { %2214 = vmatmul.msk.f32.vlgmr.msra.gmra.mxu2 %vm1050_vm1, %v1036_v26 }
 0x943   :  { %v962_v27 = vpop.xlane.xlu2 %961 }
 0x944   :  { %v964_v28 = vmul.f32 %v962_v27, %v2534_v17 }
 0x946   :  { %v966_v29 = vadd.f32 1e-05, %v964_v28 }
 0x948   :  { %2358 = vrsqrt.f32 %v966_v29  ;;  %vm983_vm3 = vweird.f32 %v966_v29 }
 0x94e   :  { %v2359_v30 = vpop.eup %2358 }
 0x94f   :  { %v978_v31 = vmul.f32 %v2359_v30, %v966_v29  ;;  %vm984_vm2 = vweird.f32 %v2359_v30 }
 0x950   :  { %vm985_vm4 = vmor %vm983_vm3, %vm984_vm2 }
 0x951   :  { %v979_v32 = vmul.f32 %v2359_v30, %v978_v31 }
 0x953   :  { %v980_v33 = vmul.f32 0.5, %v979_v32 }
 0x955   :  { %v981_v35 = vsub.f32 1.5, %v980_v33 }
 0x957   :  { %v982_v34 = vmul.f32 %v2359_v30, %v981_v35 }
 0x959   :  { %v986_v36 = vsel %vm985_vm4, %v2359_v30, %v982_v34 }
 0x95a   :  { %v988_v37 = vmul.f32 %v986_v36, %v954_v18 }
 0x95c   :  { %v993_v40 = vmul.f32 %v2306_v1, %v988_v37 }
 0x95e   :  { %v998_v39 = vadd.f32 %v2307_v6, %v993_v40  ;;  %v2300_v6 = vld [vmem:[%s3131_s19 + $0x1] ss:$0 sm:$0xff] }
 0x960   :  { %2213 = vmatmul.msk.f32.gmra.mxu1 %vm79_vm0, %v998_v39 }
 0x981   :  { %v1074_v57 = vpop.f32.mrf.mxu2 }
 0x982   :  { %v1075_v41 = vadd.f32 %v2309_v0, %v1074_v57 }
 0x984   :  { %v2796_v42 = vadd.f32 %v1075_v41, %v2725_v38  ;;  %v2862_v41 = vld [vmem:[%s3096_s2] ss:$0 sm:$0xff] }
 0x986   :  { %v1086_v43 = vsel %vm79_vm0, %v2796_v42, 0.0 }
 0x987   :  { %1087 = vadd.xlane.f32.xlu2 %v1086_v43 }
 0x9dd   :  { %v1033_v44 = vpop.f32.mrf.mxu1 }
 0x9de   :  { %v1034_v5 = vadd.f32 %v2308_v23, %v1033_v44 }
 0x9e0   :  { %v1037_v45 = vmax.f32 %v1034_v5, 0.0 }
 0x9e2   :  { %2215 = vmatmul.msk.f32.gmra.mxu2 %vm1050_vm1, %v1037_v45 }
 0x9fa   :  { %v1088_v46 = vpop.xlane.xlu2 %1087 }
 0x9fb   :  { %v1092_v47 = vmul.f32 %v1088_v46, %v2534_v17 }
 0x9fd   :  { %v1094_v48 = vsub.f32 %v2796_v42, %v1092_v47 }
 0x9ff   :  { %v1096_v50 = vmul.f32 %v1094_v48, %v1094_v48 }
 0xa01   :  { %v1098_v51 = vsel %vm79_vm0, %v1096_v50, 0.0 }
 0xa02   :  { %1099 = vadd.xlane.f32.xlu2 %v1098_v51 }
 0xa65   :  { %v1077_v38 = vpop.f32.mrf.mxu2 }
 0xa66   :  { %v1078_v58 = vadd.f32 %v2309_v0, %v1077_v38 }
 0xa68   :  { %v2805_v52 = vadd.f32 %v1078_v58, %v2735_v49  ;;  %v2218_v49 = vld [vmem:[%s3095_s5 + $0x20] sm:$0xff] }
 0xa69   :  { %1171 = vmatpush.msra.mxu0 %v2218_v49 }
 0xa6a   :  { %v1089_v9 = vsel %vm79_vm0, %v2805_v52, 0.0 }
 0xa6b   :  { %1090 = vadd.xlane.f32.xlu2 %v1089_v9 }
 0xa75   :  { %v1100_v19 = vpop.xlane.xlu2 %1099 }
 0xa76   :  { %v1104_v56 = vmul.f32 %v1100_v19, %v2534_v17 }
 0xa78   :  { %v1106_v59 = vadd.f32 1e-05, %v1104_v56 }
 0xa7a   :  { %2360 = vrsqrt.f32 %v1106_v59  ;;  %vm1114_vm6 = vweird.f32 %v1106_v59 }
 0xa80   :  { %v2361_v60 = vpop.eup %2360 }
 0xa81   :  { %v1109_v61 = vmul.f32 %v2361_v60, %v1106_v59  ;;  %vm1115_vm5 = vweird.f32 %v2361_v60 }
 0xa82   :  { %vm1116_vm7 = vmor %vm1114_vm6, %vm1115_vm5 }
 0xa83   :  { %v1110_v63 = vmul.f32 %v2361_v60, %v1109_v61  ;;  %v2895_v61 = vld [vmem:[%s3096_s2 + $0x1] ss:$0 sm:$0xff] }
 0xa85   :  { %v1111_v1 = vmul.f32 0.5, %v1110_v63 }
 0xa87   :  { %v1112_v3 = vsub.f32 1.5, %v1111_v1 }
 0xa89   :  { %v1113_v4 = vmul.f32 %v2361_v60, %v1112_v3 }
 0xa8b   :  { %v1117_v7 = vsel %vm1116_vm7, %v2361_v60, %v1113_v4 }
 0xa8c   :  { %v1128_v8 = vmul.f32 %v1117_v7, %v1094_v48 }
 0xa8e   :  { %v1133_v10 = vmul.f32 %v2300_v6, %v1128_v8 }
 0xa90   :  { %v1138_v12 = vadd.f32 %v2301_v11, %v1133_v10 }
 0xa92   :  { %2223 = vmatmul.msk.f32.vlgmr.msra.gmra.mxu0 %vm79_vm0, %v1138_v12 }
 0xade   :  { %v1091_v13 = vpop.xlane.xlu2 %1090 }
 0xadf   :  { %v1093_v14 = vmul.f32 %v1091_v13, %v2534_v17 }
 0xae1   :  { %v1095_v15 = vsub.f32 %v2805_v52, %v1093_v14 }
 0xae3   :  { %v1097_v16 = vmul.f32 %v1095_v15, %v1095_v15 }
 0xae5   :  { %v1101_v18 = vsel %vm79_vm0, %v1097_v16, 0.0 }
 0xae6   :  { %1102 = vadd.xlane.f32.xlu2 %v1101_v18 }
 0xb0f   :  { %v1173_v2 = vpop.f32.mrf.mxu0 }
 0xb10   :  { %v2835_v20 = vadd.f32 %v2310_v62, %v1173_v2 }
 0xb12   :  { %1344 = vrot.lane.b32.xlu1 %v2835_v20, %s2409_s23  ;;  %1187 = vrot.lane.b32.xlu0 %v2835_v20, %s2408_s3  ;;  %v2842_v21 = vmul.f32 0.35355338, %v2835_v20 }
 0xb14   :  { %1342 = vrot.lane.b32.xlu2 %v2842_v21, %s2410_s24 }
 0xb1c   :  { %1446 = vrot.lane.b32.xlu2 %v2835_v20, %s2412_s30 }
 0xb59   :  { %v1103_v22 = vpop.xlane.xlu2 %1102 }
 0xb5a   :  { %v1105_v23 = vmul.f32 %v1103_v22, %v2534_v17 }
 0xb5c   :  { %v1107_v24 = vadd.f32 1e-05, %v1105_v23 }
 0xb5e   :  { %2362 = vrsqrt.f32 %v1107_v24  ;;  %vm1124_vm10 = vweird.f32 %v1107_v24 }
 0xb64   :  { %v2363_v25 = vpop.eup %2362 }
 0xb65   :  { %v1119_v26 = vmul.f32 %v2363_v25, %v1107_v24  ;;  %vm1125_vm9 = vweird.f32 %v2363_v25 }
 0xb66   :  { %vm1126_vm11 = vmor %vm1124_vm10, %vm1125_vm9 }
 0xb67   :  { %v1120_v27 = vmul.f32 %v2363_v25, %v1119_v26 }
 0xb69   :  { %v1121_v28 = vmul.f32 0.5, %v1120_v27 }
 0xb6b   :  { %v1122_v29 = vsub.f32 1.5, %v1121_v28 }
 0xb6d   :  { %v1123_v30 = vmul.f32 %v2363_v25, %v1122_v29 }
 0xb6e   :  { %v1343_v37 = vpop.permute.xlu2 %1342 }
 0xb6f   :  { %v1127_v31 = vsel %vm1126_vm11, %v2363_v25, %v1123_v30 }
 0xb70   :  { %v1129_v32 = vmul.f32 %v1127_v31, %v1095_v15 }
 0xb72   :  { %v1134_v33 = vmul.f32 %v2300_v6, %v1129_v32 }
 0xb74   :  { %v1139_v35 = vadd.f32 %v2301_v11, %v1134_v33 }
 0xb76   :  { %2224 = vmatmul.msk.f32.gmra.mxu0 %vm79_vm0, %v1139_v35  ;;  %v1447_v56 = vpop.permute.xlu2 %1446 }
 0xb84   :  { %v1345_v34 = vpop.permute.xlu1 %1344  ;;  %v1188_v36 = vpop.permute.xlu0 %1187 }
 0xb85   :  { %2229 = vmatpush.xpose.msk.msrb.mxu3 %vm193_vm8, %v1188_v36 }
 0xb88   :  { %2230 = vmatmul.msk.f32.vlgmr.msrb.gmra.mxu3 %vm193_vm8, %v2842_v21 }
 0xb89   :  { %2235 = vmatpush.xpose.msk.msra.mxu3 %vm193_vm8, %v1345_v34 }
 0xb90   :  { %2236 = vmatmul.msk.f32.vlgmr.msra.gmra.mxu3 %vm193_vm8, %v1343_v37 }
 0xbf3   :  { %v1176_v40 = vpop.f32.mrf.mxu0 }
 0xbf4   :  { %v2855_v39 = vadd.f32 %v2310_v62, %v1176_v40 }
 0xbf6   :  { %1215 = vrot.lane.b32.xlu0 %v2855_v39, %s2408_s3  ;;  %s3133_s3 = smov 80   ;;  %v2876_v47 = vmul.f32 0.35355338, %v2855_v39 }
 0xc0b   :  { %v1211_v0 = vpop.f32.mrf.mxu3 }
 0xc0c   :  { %v1212_v5 = vadd.f32 %v2862_v41, %v1211_v0 }
 0xc0e   :  { %v1242_v45 = vsel %vm193_vm8, %v1212_v5, -inf }
 0xc13   :  { %v1367_v57 = vpop.f32.mrf.mxu3 }
 0xc14   :  { %v1368_v43 = vadd.f32 %v2862_v41, %v1367_v57  ;;  %v2225_v57 = vld [vmem:[%s3097_s7 + $0x20] sm:$0xff] }
 0xc16   :  { %v1398_v44 = vsel %vm193_vm8, %v1368_v43, -inf }
 0xc17   :  { %1399 = vmax.xlane.f32.xlu1 %v1398_v44 }
 0xc20   :  { %1243 = vmax.xlane.f32.xlu0 %v1242_v45 }
 0xc30   :  { %1290 = vrot.lane.b32.xlu1 %v2835_v20, %s3132_s27 }
 0xc34   :  { %1372 = vrot.lane.b32.xlu0 %v2855_v39, %s2409_s23  ;;  %s3134_s23 = smov 112  }
 0xc38   :  { %1558 = vrot.lane.b32.xlu1 %v2835_v20, %s3133_s3 }
 0xc68   :  { %v1216_v46 = vpop.permute.xlu0 %1215 }
 0xc69   :  { %2231 = vmatpush.xpose.msk.msrb.mxu1 %vm193_vm8, %v1216_v46 }
 0xc6c   :  { %2232 = vmatmul.msk.f32.vlgmr.msrb.gmra.mxu1 %vm193_vm8, %v2876_v47 }
 0xc8a   :  { %v1400_v48 = vpop.xlane.xlu1 %1399 }
 0xc8b   :  { %v1404_v50 = vsub.f32 %v1368_v43, %v1400_v48  ;;  %v2226_v43 = vld [vmem:[%s3097_s7 + $0x28] sm:$0xff] }
 0xc8c   :  { %1519 = vmatpush.msrb.mxu3 %v2226_v43 }
 0xc8d   :  { %v1406_v51 = vmul.f32 1.442695, %v1404_v50 }
 0xc8f   :  { %2364 = vpow2.f32 %v1406_v51 }
 0xc93   :  { %v1244_v38 = vpop.xlane.xlu0 %1243 }
 0xc94   :  { %v1248_v58 = vsub.f32 %v1212_v5, %v1244_v38 }
 0xc95   :  { %v2880_v9 = vpop.eup %2364 }
 0xc96   :  { %v1250_v53 = vmul.f32 1.442695, %v1248_v58  ;;  %v1410_v54 = vsel %vm193_vm8, %v2880_v9, 0.0 }
 0xc97   :  { %1411 = vadd.xlane.f32.xlu0 %v1410_v54 }
 0xc98   :  { %2366 = vpow2.f32 %v1250_v53 }
 0xc9e   :  { %v2367_v55 = vpop.eup %2366 }
 0xc9f   :  { %v1254_v49 = vsel %vm193_vm8, %v2367_v55, 0.0 }
 0xca0   :  { %1255 = vadd.xlane.f32.xlu2 %v1254_v49 }
 0xca2   :  { %v1291_v19 = vpop.permute.xlu1 %1290 }
 0xca3   :  { %1311 = vmatpush.msrb.mxu2 %v1291_v19 }
 0xca5   :  { %1467 = vmatpush.msra.mxu2 %v1447_v56 }
 0xca6   :  { %v1373_v59 = vpop.permute.xlu0 %1372 }
 0xca7   :  { %2237 = vmatpush.xpose.msk.msra.mxu1 %vm193_vm8, %v1373_v59 }
 0xcaa   :  { %v1559_v30 = vpop.permute.xlu1 %1558 }
 0xcab   :  { %1556 = vrot.lane.b32.xlu0 %v2842_v21, %s3134_s23  ;;  %1548 = vmatpush.msrb.mxu1 %v2225_v57 }
 0xcb3   :  { %1316 = vrot.lane.b32.xlu0 %v2855_v39, %s3132_s27 }
 0xcb8   :  { %1370 = vrot.lane.b32.xlu2 %v2876_v47, %s2410_s24 }
 0xce9   :  { %v1239_v60 = vpop.f32.mrf.mxu1 }
 0xcea   :  { %v1240_v63 = vadd.f32 %v2895_v61, %v1239_v60 }
 0xcec   :  { %v1245_v1 = vsel %vm193_vm8, %v1240_v63, -inf }
 0xced   :  { %1246 = vmax.xlane.f32.xlu2 %v1245_v1 }
 0xd0a   :  { %v1412_v3 = vpop.xlane.xlu0 %1411 }
 0xd0b   :  { %2368 = vrcp.f32 %v1412_v3  ;;  %v1427_v25 = vand.u32 2147483648, %v1412_v3  ;;  %vm1421_vm3 = vweird.f32 %v1412_v3  ;;  %v1425_v27 = vand.u32 2147483647, %v1412_v3 }
 0xd0d   :  { %v1428_v32 = vor.u32 1.1754944e-38, %v1427_v25  ;;  %vm1426_vm5 = vcmp.eq.f32.partialorder %v1425_v27, 8.507059e+37 }
 0xd11   :  { %v2369_v6 = vpop.eup %2368 }
 0xd12   :  { %v1417_v7 = vmul.f32 %v2369_v6, %v1412_v3  ;;  %vm1422_vm15 = vweird.f32 %v2369_v6 }
 0xd13   :  { %v1256_v4 = vpop.xlane.xlu2 %1255  ;;  %vm1423_vm4 = vmor %vm1421_vm3, %vm1422_vm15 }
 0xd14   :  { %2370 = vrcp.f32 %v1256_v4  ;;  %v1418_v8 = vsub.f32 1.0, %v1417_v7  ;;  %v1271_v15 = vand.u32 2147483648, %v1256_v4  ;;  %v1269_v62 = vand.u32 2147483647, %v1256_v4 }
 0xd15   :  { %vm1265_vm13 = vweird.f32 %v1256_v4 }
 0xd16   :  { %v1419_v16 = vmul.f32 %v2369_v6, %v1418_v8  ;;  %v1272_v22 = vor.u32 1.1754944e-38, %v1271_v15  ;;  %vm1270_vm2 = vcmp.eq.f32.partialorder %v1269_v62, 8.507059e+37 }
 0xd18   :  { %v1420_v23 = vadd.f32 %v2369_v6, %v1419_v16 }
 0xd1a   :  { %v2371_v11 = vpop.eup %2370  ;;  %v1424_v31 = vsel %vm1423_vm4, %v2369_v6, %v1420_v23 }
 0xd1b   :  { %v1261_v10 = vmul.f32 %v2371_v11, %v1256_v4  ;;  %v1371_v12 = vpop.permute.xlu2 %1370  ;;  %vm1266_vm12 = vweird.f32 %v2371_v11  ;;  %v1429_v33 = vsel %vm1426_vm5, %v1428_v32, %v1424_v31 }
 0xd1c   :  { %2238 = vmatmul.msk.f32.vlgmr.msra.gmra.mxu1 %vm193_vm8, %v1371_v12  ;;  %vm1267_vm14 = vmor %vm1265_vm13, %vm1266_vm12  ;;  %v1430_v35 = vmul.f32 %v2880_v9, %v1429_v33 }
 0xd1d   :  { %v1262_v13 = vsub.f32 1.0, %v1261_v10  ;;  %v1557_v14 = vpop.permute.xlu0 %1556 }
 0xd1f   :  { %v1263_v18 = vmul.f32 %v2371_v11, %v1262_v13 }
 0xd21   :  { %v1264_v2 = vadd.f32 %v2371_v11, %v1263_v18 }
 0xd23   :  { %v1268_v24 = vsel %vm1267_vm14, %v2371_v11, %v1264_v2 }
 0xd24   :  { %v1273_v26 = vsel %vm1270_vm2, %v1272_v22, %v1268_v24 }
 0xd25   :  { %v1317_v28 = vpop.permute.xlu0 %1316  ;;  %v1274_v29 = vmul.f32 %v2367_v55, %v1273_v26 }
 0xd26   :  { %1337 = vmatpush.msrb.mxu0 %v1317_v28 }
 0xd27   :  { %2233 = vmatmul.msk.f32.vlgmr.msrb.gmra.mxu2 %vm193_vm8, %v1274_v29 }
 0xd28   :  { %2245 = vmatpush.xpose.msk.msrb.mxu2 %vm193_vm8, %v1559_v30 }
 0xd2f   :  { %2239 = vmatmul.msk.f32.vlgmr.msra.gmra.mxu2 %vm193_vm8, %v1430_v35 }
 0xd37   :  { %2246 = vmatmul.msk.f32.vlgmr.msrb.gmra.mxu2 %vm193_vm8, %v1557_v14 }
 0xd60   :  { %v1247_v34 = vpop.xlane.xlu2 %1246 }
 0xd61   :  { %v1249_v36 = vsub.f32 %v1240_v63, %v1247_v34 }
 0xd63   :  { %v1252_v37 = vmul.f32 1.442695, %v1249_v36 }
 0xd65   :  { %2372 = vpow2.f32 %v1252_v37 }
 0xd6b   :  { %v2373_v40 = vpop.eup %2372 }
 0xd6c   :  { %v1257_v0 = vsel %vm193_vm8, %v2373_v40, 0.0 }
 0xd6d   :  { %1258 = vadd.xlane.f32.xlu1 %v1257_v0 }
 0xd86   :  { %1472 = vrot.lane.b32.xlu1 %v2855_v39, %s2412_s30  ;;  %s3136_s30 = smov 48  }
 0xd8e   :  { %1745 = vrot.lane.b32.xlu1 %v2835_v20, %s3135_s1 }
 0xd99   :  { %v1395_v44 = vpop.f32.mrf.mxu1 }
 0xd9a   :  { %v1396_v5 = vadd.f32 %v2895_v61, %v1395_v44 }
 0xd9c   :  { %v1401_v45 = vsel %vm193_vm8, %v1396_v5, -inf }
 0xd9d   :  { %1402 = vmax.xlane.f32.xlu0 %v1401_v45 }
 0xdaa   :  { %v1313_v46 = vpop.f32.mrf.mxu2 }
 0xdab   :  { %2243 = vmatmul.msk.f32.vlgmr.msrb.gmra.mxu1 %vm193_vm8, %v1313_v46 }
 0xdb1   :  { %1586 = vrot.lane.b32.xlu0 %v2855_v39, %s3133_s3 }
 0xdb2   :  { %v1469_v48 = vpop.f32.mrf.mxu2 }
 0xdb3   :  { %2241 = vmatmul.msk.f32.vlgmr.msrb.gmra.mxu3 %vm193_vm8, %v1469_v48 }
 0xdb9   :  { %1660 = vrot.lane.b32.xlu0 %v2835_v20, %s3136_s30 }
 0xdba   :  { %v1581_v50 = vpop.f32.mrf.mxu2 }
 0xdbb   :  { %v1582_v51 = vadd.f32 %v2862_v41, %v1581_v50 }
 0xdbd   :  { %v1612_v38 = vsel %vm193_vm8, %v1582_v51, -inf }
 0xdbe   :  { %1613 = vmax.xlane.f32.xlu2 %v1612_v38 }
 0xdc1   :  { %1773 = vrot.lane.b32.xlu0 %v2855_v39, %s3135_s1 }
 0xdd6   :  { %1584 = vrot.lane.b32.xlu2 %v2876_v47, %s3134_s23 }
 0xde0   :  { %v1259_v58 = vpop.xlane.xlu1 %1258 }
 0xde1   :  { %2374 = vrcp.f32 %v1259_v58  ;;  %v1286_v55 = vand.u32 2147483648, %v1259_v58  ;;  %v1284_v19 = vand.u32 2147483647, %v1259_v58  ;;  %vm1280_vm7 = vweird.f32 %v1259_v58 }
 0xde3   :  { %v1287_v59 = vor.u32 1.1754944e-38, %v1286_v55  ;;  %vm1285_vm10 = vcmp.eq.f32.partialorder %v1284_v19, 8.507059e+37 }
 0xde7   :  { %v2375_v9 = vpop.eup %2374 }
 0xde8   :  { %v1276_v53 = vmul.f32 %v2375_v9, %v1259_v58  ;;  %vm1281_vm6 = vweird.f32 %v2375_v9  ;;  %v2227_v58 = vld [vmem:[%s3097_s7 + $0x30] sm:$0xff] }
 0xde9   :  { %vm1282_vm9 = vmor %vm1280_vm7, %vm1281_vm6  ;;  %1733 = vmatpush.msra.mxu3 %v2227_v58 }
 0xdea   :  { %v1277_v54 = vsub.f32 1.0, %v1276_v53 }
 0xdec   :  { %v1278_v49 = vmul.f32 %v2375_v9, %v1277_v54 }
 0xdee   :  { %v1279_v56 = vadd.f32 %v2375_v9, %v1278_v49 }
 0xdf0   :  { %v1283_v60 = vsel %vm1282_vm9, %v2375_v9, %v1279_v56 }
 0xdf1   :  { %v1288_v63 = vsel %vm1285_vm10, %v1287_v59, %v1283_v60 }
 0xdf2   :  { %v1289_v1 = vmul.f32 %v2373_v40, %v1288_v63 }
 0xdf4   :  { %2234 = vmatmul.msk.f32.vlgmr.msrb.gmra.mxu0 %vm193_vm8, %v1289_v1 }
 0xdf8   :  { %v1473_v3 = vpop.permute.xlu1 %1472 }
 0xdf9   :  { %1493 = vmatpush.msra.mxu0 %v1473_v3 }
 0xe00   :  { %v1746_v4 = vpop.permute.xlu1 %1745 }
 0xe01   :  { %2253 = vmatpush.xpose.msk.msra.mxu1 %vm193_vm8, %v1746_v4 }
 0xe10   :  { %v1403_v6 = vpop.xlane.xlu0 %1402 }
 0xe11   :  { %v1405_v7 = vsub.f32 %v1396_v5, %v1403_v6 }
 0xe13   :  { %v1408_v11 = vmul.f32 1.442695, %v1405_v7 }
 0xe15   :  { %2376 = vpow2.f32 %v1408_v11 }
 0xe1b   :  { %v2377_v8 = vpop.eup %2376 }
 0xe1c   :  { %v1413_v10 = vsel %vm193_vm8, %v2377_v8, 0.0 }
 0xe1d   :  { %1414 = vadd.xlane.f32.xlu1 %v1413_v10 }
 0xe23   :  { %v1587_v12 = vpop.permute.xlu0 %1586 }
 0xe24   :  { %2247 = vmatpush.xpose.msk.msrb.mxu0 %vm193_vm8, %v1587_v12 }
 0xe28   :  { %v2947_v38 = vpop.f32.mrf.mxu1 }
 0xe2b   :  { %v1661_v13 = vpop.permute.xlu0 %1660 }
 0xe2c   :  { %1681 = vmatpush.msra.mxu2 %v1661_v13 }
 0xe31   :  { %v1614_v14 = vpop.xlane.xlu2 %1613 }
 0xe32   :  { %v1618_v15 = vsub.f32 %v1582_v51, %v1614_v14 }
 0xe33   :  { %v1774_v16 = vpop.permute.xlu0 %1773 }
 0xe34   :  { %v1620_v18 = vmul.f32 1.442695, %v1618_v15  ;;  %2255 = vmatpush.xpose.msk.msrb.mxu2 %vm193_vm8, %v1774_v16 }
 0xe36   :  { %2378 = vpow2.f32 %v1620_v18  ;;  %1771 = vrot.lane.b32.xlu1 %v2876_v47, %s3137_s0 }
 0xe39   :  { %v1585_v33 = vpop.permute.xlu2 %1584 }
 0xe3c   :  { %v2379_v62 = vpop.eup %2378 }
 0xe3d   :  { %v1624_v2 = vsel %vm193_vm8, %v2379_v62, 0.0 }
 0xe3e   :  { %1625 = vadd.xlane.f32.xlu2 %v1624_v2 }
 0xe56   :  { %1743 = vrot.lane.b32.xlu2 %v2842_v21, %s3137_s0 }
 0xe71   :  { %v1339_v22 = vpop.f32.mrf.mxu0 }
 0xe72   :  { %2244 = vmatmul.msk.f32.gmra.mxu1 %vm193_vm8, %v1339_v22 }
 0xe90   :  { %v1415_v23 = vpop.xlane.xlu1 %1414 }
 0xe91   :  { %2380 = vrcp.f32 %v1415_v23  ;;  %v1442_v27 = vand.u32 2147483648, %v1415_v23  ;;  %v1440_v29 = vand.u32 2147483647, %v1415_v23  ;;  %vm1436_vm12 = vweird.f32 %v1415_v23 }
 0xe93   :  { %v1443_v30 = vor.u32 1.1754944e-38, %v1442_v27  ;;  %vm1441_vm14 = vcmp.eq.f32.partialorder %v1440_v29, 8.507059e+37 }
 0xe97   :  { %v2381_v24 = vpop.eup %2380 }
 0xe98   :  { %v1432_v25 = vmul.f32 %v2381_v24, %v1415_v23  ;;  %vm1437_vm11 = vweird.f32 %v2381_v24 }
 0xe99   :  { %vm1438_vm13 = vmor %vm1436_vm12, %vm1437_vm11 }
 0xe9a   :  { %v1433_v26 = vsub.f32 1.0, %v1432_v25 }
 0xe9c   :  { %v1434_v28 = vmul.f32 %v2381_v24, %v1433_v26 }
 0xe9e   :  { %v1435_v47 = vadd.f32 %v2381_v24, %v1434_v28 }
 0xea0   :  { %v1439_v31 = vsel %vm1438_vm13, %v2381_v24, %v1435_v47 }
 0xea1   :  { %v1444_v32 = vsel %vm1441_vm14, %v1443_v30, %v1439_v31 }
 0xea2   :  { %v1445_v21 = vmul.f32 %v2377_v8, %v1444_v32 }
 0xea4   :  { %2240 = vmatmul.msk.f32.vlgmr.msra.gmra.mxu0 %vm193_vm8, %v1445_v21 }
 0xea8   :  { %v1772_v50 = vpop.permute.xlu1 %1771 }
 0xeac   :  { %2248 = vmatmul.msk.f32.vlgmr.msrb.gmra.mxu0 %vm193_vm8, %v1585_v33 }
 0xeb1   :  { %v1626_v35 = vpop.xlane.xlu2 %1625 }
 0xeb2   :  { %2382 = vrcp.f32 %v1626_v35  ;;  %v1641_v0 = vand.u32 2147483648, %v1626_v35  ;;  %v1639_v43 = vand.u32 2147483647, %v1626_v35  ;;  %vm1635_vm2 = vweird.f32 %v1626_v35 }
 0xeb4   :  { %v1642_v5 = vor.u32 1.1754944e-38, %v1641_v0  ;;  %vm1640_vm4 = vcmp.eq.f32.partialorder %v1639_v43, 8.507059e+37 }
 0xeb8   :  { %v2383_v34 = vpop.eup %2382 }
 0xeb9   :  { %v1631_v36 = vmul.f32 %v2383_v34, %v1626_v35  ;;  %v1744_v37 = vpop.permute.xlu2 %1743  ;;  %vm1636_vm15 = vweird.f32 %v2383_v34 }
 0xeba   :  { %2254 = vmatmul.msk.f32.vlgmr.msra.gmra.mxu1 %vm193_vm8, %v1744_v37  ;;  %vm1637_vm3 = vmor %vm1635_vm2, %vm1636_vm15 }
 0xebb   :  { %v1632_v40 = vsub.f32 1.0, %v1631_v36 }
 0xebd   :  { %v1633_v57 = vmul.f32 %v2383_v34, %v1632_v40 }
 0xebf   :  { %v1634_v44 = vadd.f32 %v2383_v34, %v1633_v57 }
 0xec1   :  { %v1638_v45 = vsel %vm1637_vm3, %v2383_v34, %v1634_v44 }
 0xec2   :  { %v1643_v46 = vsel %vm1640_vm4, %v1642_v5, %v1638_v45 }
 0xec3   :  { %v1644_v48 = vmul.f32 %v2379_v62, %v1643_v46 }
 0xec5   :  { %2249 = vmatmul.msk.f32.vlgmr.msra.gmra.mxu2 %vm193_vm8, %v1644_v48 }
 0xecd   :  { %2256 = vmatmul.msk.f32.vlgmr.msrb.gmra.mxu2 %vm193_vm8, %v1772_v50 }
 0xeef   :  { %v2954_v55 = vpop.f32.mrf.mxu1 }
 0xf21   :  { %v1495_v51 = vpop.f32.mrf.mxu0 }
 0xf22   :  { %2242 = vmatmul.msk.f32.gmra.mxu3 %vm193_vm8, %v1495_v51 }
 0xf29   :  { %v1609_v9 = vpop.f32.mrf.mxu0 }
 0xf2a   :  { %v1610_v53 = vadd.f32 %v2895_v61, %v1609_v9 }
 0xf2c   :  { %v1615_v54 = vsel %vm193_vm8, %v1610_v53, -inf }
 0xf2d   :  { %1616 = vmax.xlane.f32.xlu0 %v1615_v54 }
 0xf37   :  { %v1768_v49 = vpop.f32.mrf.mxu1 }
 0xf38   :  { %v1769_v19 = vadd.f32 %v2862_v41, %v1768_v49 }
 0xf3a   :  { %v1799_v56 = vsel %vm193_vm8, %v1769_v19, -inf }
 0xf3b   :  { %1800 = vmax.xlane.f32.xlu2 %v1799_v56  ;;  %v2228_v56 = vld [vmem:[%s3097_s7 + $0x38] sm:$0xff] }
 0xf3c   :  { %1920 = vmatpush.msra.mxu2 %v2228_v56 }
 0xf48   :  { %v1683_v59 = vpop.f32.mrf.mxu2 }
 0xf49   :  { %2251 = vmatmul.msk.f32.vlgmr.msra.gmra.mxu3 %vm193_vm8, %v1683_v59 }
 0xf50   :  { %v1796_v60 = vpop.f32.mrf.mxu2 }
 0xf51   :  { %v1797_v63 = vadd.f32 %v2895_v61, %v1796_v60 }
 0xf53   :  { %v1802_v1 = vsel %vm193_vm8, %v1797_v63, -inf }
 0xf54   :  { %1803 = vmax.xlane.f32.xlu1 %v1802_v1  ;;  %v1521_v1 = vpop.f32.mrf.mxu3 }
 0xfa0   :  { %v1617_v3 = vpop.xlane.xlu0 %1616 }
 0xfa1   :  { %v1619_v4 = vsub.f32 %v1610_v53, %v1617_v3 }
 0xfa3   :  { %v1622_v6 = vmul.f32 1.442695, %v1619_v4 }
 0xfa5   :  { %2384 = vpow2.f32 %v1622_v6  ;;  %v1524_v3 = vpop.f32.mrf.mxu3  ;;  %v1551_v6 = vadd.f32 %v2947_v38, %v1521_v1 }
 0xfab   :  { %v2385_v7 = vpop.eup %2384 }
 0xfac   :  { %v1627_v11 = vsel %vm193_vm8, %v2385_v7, 0.0 }
 0xfad   :  { %1628 = vadd.xlane.f32.xlu0 %v1627_v11  ;;  %v2311_v11 = vld [vmem:[%s3098_s8 + $0x1] ss:$0 sm:$0xff] }
 0xfae   :  { %v1801_v41 = vpop.xlane.xlu2 %1800 }
 0xfaf   :  { %v1805_v8 = vsub.f32 %v1769_v19, %v1801_v41 }
 0xfb1   :  { %v1807_v10 = vmul.f32 1.442695, %v1805_v8 }
 0xfb3   :  { %2386 = vpow2.f32 %v1807_v10 }
 0xfb9   :  { %v2387_v12 = vpop.eup %2386 }
 0xfba   :  { %v1811_v13 = vsel %vm193_vm8, %v2387_v12, 0.0 }
 0xfbb   :  { %1812 = vadd.xlane.f32.xlu2 %v1811_v13 }
 0xfc1   :  { %1686 = vrot.lane.b32.xlu0 %v2855_v39, %s3136_s30 }
 0xfc7   :  { %v1804_v61 = vpop.xlane.xlu1 %1803 }
 0xfc8   :  { %v1806_v14 = vsub.f32 %v1797_v63, %v1804_v61 }
 0xfca   :  { %v1809_v15 = vmul.f32 1.442695, %v1806_v14  ;;  %v1554_v14 = vadd.f32 %v2954_v55, %v1524_v3 }
 0xfcc   :  { %2388 = vpow2.f32 %v1809_v15  ;;  %v1735_v4 = vpop.f32.mrf.mxu3 }
 0xfd2   :  { %v2389_v16 = vpop.eup %2388 }
 0xfd3   :  { %1847 = vrot.lane.b32.xlu2 %v2835_v20, %s3138_s25  ;;  %v1814_v18 = vsel %vm193_vm8, %v2389_v16, 0.0 }
 0xfd4   :  { %1815 = vadd.xlane.f32.xlu1 %v1814_v18 }
 0xfed   :  { %1873 = vrot.lane.b32.xlu1 %v2855_v39, %s3138_s25 }
0x1020   :  { %v1629_v62 = vpop.xlane.xlu0 %1628 }
0x1021   :  { %2390 = vrcp.f32 %v1629_v62  ;;  %v1656_v24 = vand.u32 2147483648, %v1629_v62  ;;  %v1654_v26 = vand.u32 2147483647, %v1629_v62  ;;  %vm1650_vm6 = vweird.f32 %v1629_v62 }
0x1023   :  { %v1657_v20 = vor.u32 1.1754944e-38, %v1656_v24  ;;  %vm1655_vm9 = vcmp.eq.f32.partialorder %v1654_v26, 8.507059e+37 }
0x1027   :  { %v2391_v2 = vpop.eup %2390 }
0x1028   :  { %v1646_v22 = vmul.f32 %v2391_v2, %v1629_v62  ;;  %vm1651_vm5 = vweird.f32 %v2391_v2 }
0x1029   :  { %vm1652_vm7 = vmor %vm1650_vm6, %vm1651_vm5 }
0x102a   :  { %v1647_v23 = vsub.f32 1.0, %v1646_v22 }
0x102c   :  { %v1648_v25 = vmul.f32 %v2391_v2, %v1647_v23 }
0x102e   :  { %v1649_v27 = vadd.f32 %v2391_v2, %v1648_v25  ;;  %v1813_v28 = vpop.xlane.xlu2 %1812 }
0x102f   :  { %2392 = vrcp.f32 %v1813_v28  ;;  %v1828_v35 = vand.u32 2147483648, %v1813_v28  ;;  %v1826_v36 = vand.u32 2147483647, %v1813_v28  ;;  %vm1822_vm11 = vweird.f32 %v1813_v28 }
0x1030   :  { %v1653_v29 = vsel %vm1652_vm7, %v2391_v2, %v1649_v27 }
0x1031   :  { %v1658_v47 = vsel %vm1655_vm9, %v1657_v20, %v1653_v29  ;;  %v1829_v40 = vor.u32 1.1754944e-38, %v1828_v35  ;;  %vm1827_vm13 = vcmp.eq.f32.partialorder %v1826_v36, 8.507059e+37  ;;  %v2267_v20 = vld [vmem:[%s3102_s11 + $0x38] sm:$0xff]  ;;  %v2266_v29 = vld [vmem:[%s3102_s11 + $0x30] sm:$0xff] }
0x1032   :  { %v1659_v30 = vmul.f32 %v2385_v7, %v1658_v47  ;;  %v1741_v7 = vadd.f32 %v1735_v4, %v1551_v6  ;;  %v2265_v47 = vld [vmem:[%s3102_s11 + $0x28] sm:$0xff]  ;;  %v2273_v6 = vld [vmem:[%s3103_s13 + $0x50] sm:$0xff] }
0x1033   :  { %v1687_v39 = vpop.permute.xlu0 %1686 }
0x1034   :  { %1707 = vmatpush.msra.mxu0 %v1687_v39 }
0x1035   :  { %v2393_v31 = vpop.eup %2392  ;;  %2250 = vmatmul.msk.f32.vlgmr.msra.gmra.mxu0 %vm193_vm8, %v1659_v30  ;;  %v2264_v30 = vld [vmem:[%s3102_s11 + $0x20] sm:$0xff] }
0x1036   :  { %v1818_v32 = vmul.f32 %v2393_v31, %v1813_v28  ;;  %v1848_v21 = vpop.permute.xlu2 %1847  ;;  %vm1823_vm10 = vweird.f32 %v2393_v31 }
0x1037   :  { %1868 = vmatpush.msrb.mxu0 %v1848_v21  ;;  %vm1824_vm12 = vmor %vm1822_vm11, %vm1823_vm10 }
0x1038   :  { %v1819_v33 = vsub.f32 1.0, %v1818_v32 }
0x1039   :  { %2025 = vmatpush.msra.mxu0 %v2267_v20 }
0x103a   :  { %v1820_v34 = vmul.f32 %v2393_v31, %v1819_v33 }
0x103b   :  { %2026 = vmatpush.msra.mxu0 %v2266_v29 }
0x103c   :  { %v1821_v37 = vadd.f32 %v2393_v31, %v1820_v34 }
0x103d   :  { %2027 = vmatpush.msra.mxu0 %v2265_v47 }
0x103e   :  { %v1825_v0 = vsel %vm1824_vm12, %v2393_v31, %v1821_v37 }
0x103f   :  { %v1830_v57 = vsel %vm1827_vm13, %v1829_v40, %v1825_v0  ;;  %2028 = vmatpush.msra.mxu0 %v2264_v30  ;;  %v2312_v40 = vld [vmem:[%s3099_s9 + $0x1] ss:$0 sm:$0xff] }
0x1040   :  { %v1831_v43 = vmul.f32 %v2387_v12, %v1830_v57 }
0x1042   :  { %2257 = vmatmul.msk.f32.vlgmr.msrb.gmra.mxu0 %vm193_vm8, %v1831_v43  ;;  %v2313_v43 = vld [vmem:[%s3100_s10 + $0x1] ss:$0 sm:$0xff] }
0x1047   :  { %v1816_v44 = vpop.xlane.xlu1 %1815 }
0x1048   :  { %2394 = vrcp.f32 %v1816_v44  ;;  %v1843_v51 = vand.u32 2147483648, %v1816_v44  ;;  %vm1837_vm15 = vweird.f32 %v1816_v44  ;;  %v1841_v58 = vand.u32 2147483647, %v1816_v44 }
0x104a   :  { %v1844_v53 = vor.u32 1.1754944e-38, %v1843_v51  ;;  %vm1842_vm3 = vcmp.eq.f32.partialorder %v1841_v58, 8.507059e+37  ;;  %v2275_v58 = vld [vmem:[%s3103_s13 + $0x60] sm:$0xff] }
0x104e   :  { %v2395_v5 = vpop.eup %2394 }
0x104f   :  { %v1833_v45 = vmul.f32 %v2395_v5, %v1816_v44  ;;  %vm1838_vm14 = vweird.f32 %v2395_v5 }
0x1050   :  { %vm1839_vm2 = vmor %vm1837_vm15, %vm1838_vm14 }
0x1051   :  { %v1834_v46 = vsub.f32 1.0, %v1833_v45  ;;  %v2278_v45 = vld [vmem:[%s3103_s13 + $0x78] sm:$0xff] }
0x1052   :  { %2066 = vmatpush.msrb.mxu3 %v2278_v45  ;;  %v2317_v45 = vld [vmem:[%s3106_s16] ss:$0 sm:$0xff] }
0x1053   :  { %v1835_v48 = vmul.f32 %v2395_v5, %v1834_v46  ;;  %v2277_v46 = vld [vmem:[%s3103_s13 + $0x70] sm:$0xff] }
0x1054   :  { %2067 = vmatpush.msrb.mxu3 %v2277_v46 }
0x1055   :  { %v1836_v50 = vadd.f32 %v2395_v5, %v1835_v48  ;;  %v2276_v48 = vld [vmem:[%s3103_s13 + $0x68] sm:$0xff] }
0x1056   :  { %2068 = vmatpush.msrb.mxu3 %v2276_v48 }
0x1057   :  { %v1840_v9 = vsel %vm1839_vm2, %v2395_v5, %v1836_v50 }
0x1058   :  { %v1845_v54 = vsel %vm1842_vm3, %v1844_v53, %v1840_v9  ;;  %v2274_v53 = vld [vmem:[%s3103_s13 + $0x58] sm:$0xff]  ;;  %2069 = vmatpush.msrb.mxu3 %v2275_v58 }
0x1059   :  { %v1846_v19 = vmul.f32 %v2389_v16, %v1845_v54 }
0x105a   :  { %2070 = vmatpush.msrb.mxu3 %v2274_v53 }
0x105c   :  { %2071 = vmatpush.msrb.mxu3 %v2273_v6 }
0x105f   :  { %v1874_v49 = vpop.permute.xlu1 %1873 }
0x1060   :  { %1894 = vmatpush.msrb.mxu1 %v1874_v49 }
0x1061   :  { %2258 = vmatmul.msk.f32.vlgmr.msrb.gmra.mxu1 %vm193_vm8, %v1846_v19 }
0x10b2   :  { %v1709_v59 = vpop.f32.mrf.mxu0 }
0x10b3   :  { %2252 = vmatmul.msk.f32.gmra.mxu3 %vm193_vm8, %v1709_v59 }
0x10bf   :  { %v1870_v60 = vpop.f32.mrf.mxu0 }
0x10c0   :  { %2259 = vmatmul.msk.f32.vlgmr.msra.gmra.mxu2 %vm193_vm8, %v1870_v60 }
0x10de   :  { %v1896_v63 = vpop.f32.mrf.mxu1 }
0x10df   :  { %2260 = vmatmul.msk.f32.gmra.mxu2 %vm193_vm8, %v1896_v63 }
0x1136   :  { %v1738_v61 = vpop.f32.mrf.mxu3 }
0x1137   :  { %v1742_v15 = vadd.f32 %v1738_v61, %v1554_v14 }
0x1143   :  { %v1922_v41 = vpop.f32.mrf.mxu2 }
0x1144   :  { %v1928_v8 = vadd.f32 %v1922_v41, %v1741_v7  ;;  %v2272_v7 = vld [vmem:[%s3103_s13 + $0x48] sm:$0xff]  ;;  %v2314_v41 = vld [vmem:[%s3101_s12 + $0x1] ss:$0 sm:$0xff] }
0x1145   :  { %2072 = vmatpush.msrb.mxu3 %v2272_v7 }
0x1146   :  { %v1935_v10 = vadd.f32 %v2311_v11, %v1928_v8 }
0x1148   :  { %v2984_v12 = vadd.f32 %v1935_v10, %v2796_v42 }
0x114a   :  { %v1943_v13 = vsel %vm79_vm0, %v2984_v12, 0.0 }
0x114b   :  { %1944 = vadd.xlane.f32.xlu0 %v1943_v13 }
0x1162   :  { %v1925_v38 = vpop.f32.mrf.mxu2 }
0x1163   :  { %v1929_v16 = vadd.f32 %v1925_v38, %v1742_v15  ;;  %v2315_v38 = vld [vmem:[%s3104_s14 + $0x1] ss:$0 sm:$0xff] }
0x1165   :  { %v1936_v18 = vadd.f32 %v2311_v11, %v1929_v16  ;;  %v2271_v11 = vld [vmem:[%s3103_s13 + $0x40] sm:$0xff] }
0x1166   :  { %2073 = vmatpush.msrb.mxu3 %v2271_v11 }
0x1167   :  { %v2990_v62 = vadd.f32 %v1936_v18, %v2805_v52 }
0x1169   :  { %v1946_v2 = vsel %vm79_vm0, %v2990_v62, 0.0 }
0x116a   :  { %1947 = vadd.xlane.f32.xlu2 %v1946_v2 }
0x11be   :  { %v1945_v42 = vpop.xlane.xlu0 %1944 }
0x11bf   :  { %v1949_v22 = vmul.f32 %v1945_v42, %v2534_v17 }
0x11c1   :  { %v1951_v23 = vsub.f32 %v2984_v12, %v1949_v22 }
0x11c3   :  { %v1953_v24 = vmul.f32 %v1951_v23, %v1951_v23 }
0x11c5   :  { %v1955_v25 = vsel %vm79_vm0, %v1953_v24, 0.0 }
0x11c6   :  { %1956 = vadd.xlane.f32.xlu1 %v1955_v25 }
0x11dd   :  { %v1948_v55 = vpop.xlane.xlu2 %1947 }
0x11de   :  { %v1950_v26 = vmul.f32 %v1948_v55, %v2534_v17 }
0x11e0   :  { %v1952_v27 = vsub.f32 %v2990_v62, %v1950_v26 }
0x11e2   :  { %v1954_v52 = vmul.f32 %v1952_v27, %v1952_v27 }
0x11e4   :  { %v1958_v28 = vsel %vm79_vm0, %v1954_v52, 0.0 }
0x11e5   :  { %1959 = vadd.xlane.f32.xlu0 %v1958_v28 }
0x1239   :  { %v1957_v39 = vpop.xlane.xlu1 %1956 }
0x123a   :  { %v1961_v31 = vmul.f32 %v1957_v39, %v2534_v17  ;;  %v2141_v39 = vld [vmem:[%s3107_s17 + $0x10] sm:$0xff] }
0x123c   :  { %v1963_v32 = vadd.f32 1e-05, %v1961_v31  ;;  %v2140_v31 = vld [vmem:[%s3107_s17 + $0x8] sm:$0xff] }
0x123e   :  { %2396 = vrsqrt.f32 %v1963_v32  ;;  %vm1971_vm4 = vweird.f32 %v1963_v32 }
0x1244   :  { %v2397_v21 = vpop.eup %2396 }
0x1245   :  { %v1966_v33 = vmul.f32 %v2397_v21, %v1963_v32  ;;  %vm1972_vm8 = vweird.f32 %v2397_v21  ;;  %v2139_v32 = vld [vmem:[%s3107_s17] sm:$0xff] }
0x1246   :  { %vm1973_vm5 = vmor %vm1971_vm4, %vm1972_vm8 }
0x1247   :  { %v1967_v35 = vmul.f32 %v2397_v21, %v1966_v33 }
0x1249   :  { %v1968_v34 = vmul.f32 0.5, %v1967_v35 }
0x124b   :  { %v1969_v36 = vsub.f32 1.5, %v1968_v34 }
0x124d   :  { %v1970_v37 = vmul.f32 %v2397_v21, %v1969_v36 }
0x124f   :  { %v1974_v0 = vsel %vm1973_vm5, %v2397_v21, %v1970_v37 }
0x1250   :  { %v1985_v57 = vmul.f32 %v1974_v0, %v1951_v23 }
0x1252   :  { %v1990_v44 = vmul.f32 %v2312_v40, %v1985_v57 }
0x1254   :  { %v1995_v5 = vadd.f32 %v2313_v43, %v1990_v44 }
0x1256   :  { %2269 = vmatmul.msk.f32.vlgmr.msra.gmra.mxu0 %vm79_vm0, %v1995_v5 }
0x1258   :  { %v1960_v50 = vpop.xlane.xlu0 %1959 }
0x1259   :  { %v1962_v51 = vmul.f32 %v1960_v50, %v2534_v17 }
0x125b   :  { %v1964_v9 = vadd.f32 1e-05, %v1962_v51 }
0x125d   :  { %2398 = vrsqrt.f32 %v1964_v9  ;;  %vm1981_vm7 = vweird.f32 %v1964_v9 }
0x1263   :  { %v2399_v54 = vpop.eup %2398 }
0x1264   :  { %v1976_v49 = vmul.f32 %v2399_v54, %v1964_v9  ;;  %vm1982_vm6 = vweird.f32 %v2399_v54 }
0x1265   :  { %vm1983_vm9 = vmor %vm1981_vm7, %vm1982_vm6 }
0x1266   :  { %v1977_v19 = vmul.f32 %v2399_v54, %v1976_v49 }
0x1268   :  { %v1978_v56 = vmul.f32 0.5, %v1977_v19 }
0x126a   :  { %v1979_v59 = vsub.f32 1.5, %v1978_v56 }
0x126c   :  { %v1980_v60 = vmul.f32 %v2399_v54, %v1979_v59 }
0x126e   :  { %v1984_v63 = vsel %vm1983_vm9, %v2399_v54, %v1980_v60 }
0x126f   :  { %v1986_v1 = vmul.f32 %v1984_v63, %v1952_v27 }
0x1271   :  { %v1991_v3 = vmul.f32 %v2312_v40, %v1986_v1 }
0x1273   :  { %v1996_v4 = vadd.f32 %v2313_v43, %v1991_v3  ;;  %v2316_v43 = vld [vmem:[%s3105_s15] ss:$0 sm:$0xff] }
0x1275   :  { %2270 = vmatmul.msk.f32.gmra.mxu0 %vm79_vm0, %v1996_v4 }
0x12d3   :  { %v2030_v8 = vpop.f32.mrf.mxu0 }
0x12d4   :  { %v2031_v10 = vadd.f32 %v2314_v41, %v2030_v8 }
0x12d6   :  { %v2036_v13 = vmax.f32 %v2031_v10, 0.0 }
0x12d8   :  { %2280 = vmatmul.msk.f32.vlgmr.msrb.gmra.mxu3 %vm1050_vm1, %v2036_v13 }
0x12f2   :  { %v2033_v61 = vpop.f32.mrf.mxu0 }
0x12f3   :  { %v2034_v14 = vadd.f32 %v2314_v41, %v2033_v61 }
0x12f5   :  { %v2037_v15 = vmax.f32 %v2034_v14, 0.0 }
0x12f7   :  { %2281 = vmatmul.msk.f32.gmra.mxu3 %vm1050_vm1, %v2037_v15 }
0x135b   :  { %v2075_v16 = vpop.f32.mrf.mxu3 }
0x135c   :  { %v2076_v18 = vadd.f32 %v2315_v38, %v2075_v16 }
0x135e   :  { %v2081_v2 = vadd.f32 %v2076_v18, %v2984_v12 }
0x1360   :  { %v2085_v42 = vsel %vm79_vm0, %v2081_v2, 0.0 }
0x1361   :  { %2086 = vadd.xlane.f32.xlu2 %v2085_v42 }
0x137a   :  { %v2078_v22 = vpop.f32.mrf.mxu3 }
0x137b   :  { %v2079_v23 = vadd.f32 %v2315_v38, %v2078_v22 }
0x137d   :  { %v2082_v24 = vadd.f32 %v2079_v23, %v2990_v62  ;;  %v2142_v62 = vld [vmem:[%s3107_s17 + $0x18] sm:$0xff] }
0x137e   :  { %2161 = vmatpush.msra.mxu1 %v2142_v62 }
0x137f   :  { %v2088_v25 = vsel %vm79_vm0, %v2082_v24, 0.0 }
0x1380   :  { %2089 = vadd.xlane.f32.xlu0 %v2088_v25  ;;  %2162 = vmatpush.msra.mxu1 %v2141_v39 }
0x1382   :  { %2163 = vmatpush.msra.mxu1 %v2140_v31 }
0x1384   :  { %2164 = vmatpush.msra.mxu1 %v2139_v32 }
0x13d4   :  { %v2087_v55 = vpop.xlane.xlu2 %2086 }
0x13d5   :  { %v2091_v26 = vmul.f32 %v2087_v55, %v2534_v17 }
0x13d7   :  { %v2093_v27 = vsub.f32 %v2081_v2, %v2091_v26 }
0x13d9   :  { %v2095_v52 = vmul.f32 %v2093_v27, %v2093_v27 }
0x13db   :  { %v2097_v28 = vsel %vm79_vm0, %v2095_v52, 0.0 }
0x13dc   :  { %2098 = vadd.xlane.f32.xlu1 %v2097_v28 }
0x13f3   :  { %v2090_v20 = vpop.xlane.xlu0 %2089 }
0x13f4   :  { %v2092_v12 = vmul.f32 %v2090_v20, %v2534_v17 }
0x13f6   :  { %v2094_v29 = vsub.f32 %v2082_v24, %v2092_v12 }
0x13f8   :  { %v2096_v47 = vmul.f32 %v2094_v29, %v2094_v29 }
0x13fa   :  { %v2100_v30 = vsel %vm79_vm0, %v2096_v47, 0.0 }
0x13fb   :  { %2101 = vadd.xlane.f32.xlu2 %v2100_v30 }
0x144f   :  { %v2099_v21 = vpop.xlane.xlu1 %2098 }
0x1450   :  { %v2103_v33 = vmul.f32 %v2099_v21, %v2534_v17 }
0x1452   :  { %v2105_v35 = vadd.f32 1e-05, %v2103_v33 }
0x1454   :  { %2400 = vrsqrt.f32 %v2105_v35  ;;  %vm2113_vm10 = vweird.f32 %v2105_v35 }
0x145a   :  { %v2401_v34 = vpop.eup %2400 }
0x145b   :  { %v2108_v36 = vmul.f32 %v2401_v34, %v2105_v35  ;;  %vm2114_vm1 = vweird.f32 %v2401_v34 }
0x145c   :  { %vm2115_vm11 = vmor %vm2113_vm10, %vm2114_vm1 }
0x145d   :  { %v2109_v37 = vmul.f32 %v2401_v34, %v2108_v36 }
0x145f   :  { %v2110_v40 = vmul.f32 0.5, %v2109_v37 }
0x1461   :  { %v2111_v0 = vsub.f32 1.5, %v2110_v40 }
0x1463   :  { %v2112_v57 = vmul.f32 %v2401_v34, %v2111_v0 }
0x1465   :  { %v2116_v44 = vsel %vm2115_vm11, %v2401_v34, %v2112_v57 }
0x1466   :  { %v2127_v5 = vmul.f32 %v2116_v44, %v2093_v27 }
0x1468   :  { %v2132_v46 = vmul.f32 %v2316_v43, %v2127_v5 }
0x146a   :  { %v2137_v48 = vadd.f32 %v2317_v45, %v2132_v46 }
0x146c   :  { %2282 = vmatmul.msk.f32.vlgmr.msra.gmra.mxu1 %vm79_vm0, %v2137_v48 }
0x146e   :  { %v2102_v50 = vpop.xlane.xlu2 %2101 }
0x146f   :  { %v2104_v51 = vmul.f32 %v2102_v50, %v2534_v17 }
0x1471   :  { %v2106_v58 = vadd.f32 1e-05, %v2104_v51 }
0x1473   :  { %2402 = vrsqrt.f32 %v2106_v58  ;;  %vm2123_vm13 = vweird.f32 %v2106_v58 }
0x1479   :  { %v2403_v9 = vpop.eup %2402 }
0x147a   :  { %v2118_v53 = vmul.f32 %v2403_v9, %v2106_v58  ;;  %vm2124_vm12 = vweird.f32 %v2403_v9 }
0x147b   :  { %vm2125_vm14 = vmor %vm2123_vm13, %vm2124_vm12 }
0x147c   :  { %v2119_v54 = vmul.f32 %v2403_v9, %v2118_v53 }
0x147e   :  { %v2120_v49 = vmul.f32 0.5, %v2119_v54 }
0x1480   :  { %v2121_v19 = vsub.f32 1.5, %v2120_v49 }
0x1482   :  { %v2122_v56 = vmul.f32 %v2403_v9, %v2121_v19 }
0x1484   :  { %v2126_v59 = vsel %vm2125_vm14, %v2403_v9, %v2122_v56 }
0x1485   :  { %v2128_v60 = vmul.f32 %v2126_v59, %v2094_v29 }
0x1487   :  { %v2133_v63 = vmul.f32 %v2316_v43, %v2128_v60 }
0x1489   :  { %v2138_v1 = vadd.f32 %v2317_v45, %v2133_v63 }
0x148b   :  { %2283 = vmatmul.msk.f32.gmra.mxu1 %vm79_vm0, %v2138_v1 }
0x14e9   :  { %v2166_v3 = vpop.f32.mrf.mxu1 }
0x14ea   :  { %2172 = vst [vmem:[%s3108_s18] sm:$0xff] %v2166_v3 }
0x1508   :  { %v2169_v17 = vpop.f32.mrf.mxu1 }
0x1509   :  { %2173 = vst [vmem:[%s3108_s18 + $0x8] sm:$0xff] %v2169_v17 }

</bundles_post_ra>
